<compile_context>
chip_gen: v5e
topology: v5e:2x2
jax: 0.10.0
libtpu: 0.0.40
codegen_flags: <defaults>
</compile_context>

<pallas_src>
import jax
import jax.numpy as jnp
from jax.experimental import pallas as pl
from jax.experimental.pallas import tpu as pltpu

LANE = 128


def _round_up(x, m):
    return ((x + m - 1) // m) * m


def _vmem_budget_bytes():
    """Per-generation VMEM budget with headroom for Mosaic internal scratch."""
    try:
        cap = int(pltpu.get_tpu_info().vmem_capacity_bytes)   # 128 MiB v5e/v6e, 64 MiB v7x
    except Exception:
        cap = 64 << 20                                         # conservative fallback
    return int(max(cap - (12 << 20), 16 << 20))


def _pick_fc_tile_n(Hp, Op, B, fc_bytes, budget, tile_n):
    """Largest lane-multiple vocab tile whose double-buffered stream fits VMEM."""
    tn_cap = _round_up(tile_n, LANE) if tile_n is not None else 8192
    resident = 2 * 4 * B * Hp + (2 << 20)            # double-buffered h (f32) + slack
    per_col = 2 * (fc_bytes * Hp + 4 + 4 * B)        # 2x (W tile + bias + logits) per column
    tn = (budget - resident) // per_col
    tn = max((tn // LANE) * LANE, LANE)
    return int(min(tn, tn_cap, Op))


# --------------------------------------------------------------------------
# Kernel 1: fused embedding gather + single-step LSTM cell.
# --------------------------------------------------------------------------
def _lstm_step_kernel(tok_ref,                 # SMEM (B,) int32  (scalar prefetch)
                      emb_hbm_ref,             # HBM  (O, Hp) f32 (pl.ANY, manual gather)
                      wcat_hbm_ref,            # HBM  (2Hp, 4Hp) f32 (pl.ANY, one DMA)
                      h0_ref, c0_ref,          # VMEM (B, Hp) f32
                      b_gates_ref,             # VMEM (1, 4Hp) f32  (b_ih + b_hh)
                      h_out_ref, c_out_ref,    # VMEM (B, Hp) f32 out
                      xh_scr,                  # VMEM (B, 2Hp) f32  [emb | h]
                      wcat_scr,                # VMEM (2Hp, 4Hp) f32
                      sems):                   # DMA sems (B + 1,)
    B, Hp = h0_ref.shape

    # Single DMA for the stacked gate weights (largest transfer) - start first.
    w_cp = pltpu.make_async_copy(wcat_hbm_ref, wcat_scr, sems.at[B])
    w_cp.start()

    # Fused embedding gather: one small row DMA per batch element, overlapped.
    copies = []
    for b in range(B):                            # B is static and tiny
        cp = pltpu.make_async_copy(
            emb_hbm_ref.at[pl.ds(tok_ref[b], 1), :],
            xh_scr.at[pl.ds(b, 1), pl.ds(0, Hp)],
            sems.at[b])
        cp.start()
        copies.append(cp)

    # Fill the h half of [emb | h] while the DMAs are in flight.
    xh_scr[:, Hp:] = h0_ref[...]
    for cp in copies:
        cp.wait()
    w_cp.wait()

    # Single fused gate matmul: [emb, h] @ [[W_ih^T],[W_hh^T]] -> (B, 4Hp).
    gates = (jnp.dot(xh_scr[...], wcat_scr[...],
                     preferred_element_type=jnp.float32)
             + b_gates_ref[...])                  # PyTorch gate order i, f, g, o

    i_g = jax.nn.sigmoid(gates[:, 0 * Hp:1 * Hp])
    f_g = jax.nn.sigmoid(gates[:, 1 * Hp:2 * Hp])
    g_g = jnp.tanh(gates[:, 2 * Hp:3 * Hp])
    o_g = jax.nn.sigmoid(gates[:, 3 * Hp:4 * Hp])

    c_new = f_g * c0_ref[...] + i_g * g_g
    h_new = o_g * jnp.tanh(c_new)

    c_out_ref[...] = c_new
    h_out_ref[...] = h_new


# --------------------------------------------------------------------------
# Kernel 2: streamed, lane-dense vocab projection  logits = h @ W_fc + b_fc.
# --------------------------------------------------------------------------
def _fc_kernel(h_ref,        # VMEM (B, Hp) f32  (constant block -> resident)
               w_fc_ref,     # VMEM (Hp, TN) fc_dtype (streamed tile)
               b_fc_ref,     # VMEM (1, TN) f32
               logits_ref):  # VMEM (B, TN) f32 out
    h = h_ref[...].astype(w_fc_ref.dtype)         # bf16 x bf16 -> f32 on the MXU
    logits_ref[...] = (jnp.dot(h, w_fc_ref[...],
                               preferred_element_type=jnp.float32)
                       + b_fc_ref[...])


# --------------------------------------------------------------------------
# One-time parameter preparation (padded / fused / cast layouts).
# --------------------------------------------------------------------------
def prepare_params(params, *, fc_dtype=jnp.bfloat16):
    """Build padded+fused weight layouts once; reuse across decode steps."""
    f32 = jnp.float32
    emb_table = jnp.asarray(params["embedding"], f32)      # (O, H)
    w_ih_t = jnp.asarray(params["w_ih_t"], f32)            # (H, 4H)
    w_hh_t = jnp.asarray(params["w_hh_t"], f32)            # (H, 4H)
    b_gates = jnp.asarray(params["b_gates"], f32)           # (1, 4H)
    w_fc_t = jnp.asarray(params["w_fc_t"], f32)             # (H, O)
    b_fc = jnp.asarray(params["b_fc"], f32)                  # (1, O)

    O, H = emb_table.shape
    Hp = _round_up(H, LANE)                                  # lane-aligned hidden
    Op = _round_up(O, LANE)                                  # only 128-pad the vocab

    emb_p = jnp.zeros((O, Hp), f32).at[:, :H].set(emb_table)

    # Stacked gate weights [W_ih^T ; W_hh^T], each gate slice lane-aligned.
    w_cat = jnp.zeros((2 * Hp, 4 * Hp), f32)
    b_gp = jnp.zeros((1, 4 * Hp), f32)
    for g in range(4):
        w_cat = w_cat.at[:H, g * Hp:g * Hp + H].set(w_ih_t[:, g * H:(g + 1) * H])
        w_cat = w_cat.at[Hp:Hp + H, g * Hp:g * Hp + H].set(w_hh_t[:, g * H:(g + 1) * H])
        b_gp = b_gp.at[:, g * Hp:g * Hp + H].set(b_gates[:, g * H:(g + 1) * H])

    w_fc_p = jnp.zeros((Hp, Op), f32).at[:H, :O].set(w_fc_t).astype(fc_dtype)
    b_fc_p = jnp.zeros((1, Op), f32).at[:, :O].set(b_fc)

    return {
        "emb_p": emb_p, "w_cat": w_cat, "b_gp": b_gp,
        "w_fc_p": w_fc_p, "b_fc_p": b_fc_p,
        "H": H, "O": O, "Hp": Hp, "Op": Op,
    }


def decoder_forward(x_tokens, hidden, cell, prepared, *, tile_n=None):
    """
    x_tokens : (B,) int token ids
    hidden   : (num_layers=1, B, H) float32
    cell     : (num_layers=1, B, H) float32
    prepared : output of prepare_params (cached across decode steps)
    returns  : (logits (B, O), hidden (1, B, H), cell (1, B, H))
    """
    f32 = jnp.float32
    H, O = prepared["H"], prepared["O"]
    Hp, Op = prepared["Hp"], prepared["Op"]
    B = x_tokens.shape[0]

    tokens = x_tokens.astype(jnp.int32)
    h0 = jnp.zeros((B, Hp), f32).at[:, :H].set(hidden[0].astype(f32))
    c0 = jnp.zeros((B, Hp), f32).at[:, :H].set(cell[0].astype(f32))

    budget = _vmem_budget_bytes()

    # ---- call 1: embedding gather + LSTM cell (tiny, state stays f32) ----
    h1p, c1p = pl.pallas_call(
        _lstm_step_kernel,
        out_shape=(jax.ShapeDtypeStruct((B, Hp), f32),
                   jax.ShapeDtypeStruct((B, Hp), f32)),
        grid_spec=pltpu.PrefetchScalarGridSpec(
            num_scalar_prefetch=1,
            grid=(1,),
            in_specs=[
                pl.BlockSpec(memory_space=pl.ANY),                  # emb table (HBM)
                pl.BlockSpec(memory_space=pl.ANY),                  # stacked gate W (HBM)
                pl.BlockSpec((B, Hp), lambda i, tok: (0, 0)),       # h0
                pl.BlockSpec((B, Hp), lambda i, tok: (0, 0)),       # c0
                pl.BlockSpec((1, 4 * Hp), lambda i, tok: (0, 0)),   # gate bias
            ],
            out_specs=(
                pl.BlockSpec((B, Hp), lambda i, tok: (0, 0)),
                pl.BlockSpec((B, Hp), lambda i, tok: (0, 0)),
            ),
            scratch_shapes=[
                pltpu.VMEM((B, 2 * Hp), f32),          # [emb | h]
                pltpu.VMEM((2 * Hp, 4 * Hp), f32),     # single-buffered gate W
                pltpu.SemaphoreType.DMA((B + 1,)),     # B row gathers + 1 weight DMA
            ]),
        compiler_params=pltpu.CompilerParams(
            dimension_semantics=("arbitrary",),
            vmem_limit_bytes=budget),
    )(tokens, prepared["emb_p"], prepared["w_cat"], h0, c0, prepared["b_gp"])

    # ---- call 2: streamed vocab projection, vocab axis parallel (megacore) ----
    fc_bytes = jnp.dtype(prepared["w_fc_p"].dtype).itemsize
    TN = _pick_fc_tile_n(Hp, Op, B, fc_bytes, budget, tile_n)
    n_tiles = pl.cdiv(Op, TN)                      # last tile may be partial

    logits_p = pl.pallas_call(
        _fc_kernel,
        out_shape=jax.ShapeDtypeStruct((B, Op), f32),
        grid_spec=pltpu.PrefetchScalarGridSpec(
            num_scalar_prefetch=0,
            grid=(n_tiles,),
            in_specs=[
                pl.BlockSpec((B, Hp), lambda j: (0, 0)),     # h_new (resident)
                pl.BlockSpec((Hp, TN), lambda j: (0, j)),    # W_fc tile (bf16 stream)
                pl.BlockSpec((1, TN), lambda j: (0, j)),     # b_fc tile
            ],
            out_specs=pl.BlockSpec((B, TN), lambda j: (0, j))),
        compiler_params=pltpu.CompilerParams(
            dimension_semantics=("parallel",),
            vmem_limit_bytes=budget),
    )(h1p, prepared["w_fc_p"], prepared["b_fc_p"])

    logits = logits_p[:, :O]
    return logits, h1p[None, :, :H], c1p[None, :, :H]


def init_params(key, hidden_size, output_size):
    """Deterministic init, PyTorch-style uniform(-1/sqrt(H), 1/sqrt(H))."""
    k = 1.0 / jnp.sqrt(jnp.float32(hidden_size))
    keys = jax.random.split(key, 7)

    def u(kk, shape):
        return jax.random.uniform(kk, shape, jnp.float32, -k, k)

    embedding = jax.random.normal(keys[0], (output_size, hidden_size), jnp.float32)
    w_ih = u(keys[1], (4 * hidden_size, hidden_size))   # PyTorch layout
    w_hh = u(keys[2], (4 * hidden_size, hidden_size))
    b_ih = u(keys[3], (4 * hidden_size,))
    b_hh = u(keys[4], (4 * hidden_size,))
    w_fc = u(keys[5], (output_size, hidden_size))       # PyTorch layout
    b_fc = u(keys[6], (output_size,))

    return {
        "embedding": embedding,
        "w_ih_t": w_ih.T,                                # (H, 4H)
        "w_hh_t": w_hh.T,                                # (H, 4H)
        "b_gates": (b_ih + b_hh)[None, :],               # (1, 4H)
        "w_fc_t": w_fc.T,                                # (H, O)
        "b_fc": b_fc[None, :],                           # (1, O)
    }


def reference_forward(x_tokens, hidden, cell, params):
    """Pure-JAX reference matching torch.nn.LSTM single-step semantics (f32)."""
    emb = jnp.take(params["embedding"], x_tokens, axis=0)
    h0, c0 = hidden[0], cell[0]
    H = h0.shape[-1]
    gates = emb @ params["w_ih_t"] + h0 @ params["w_hh_t"] + params["b_gates"]
    i = jax.nn.sigmoid(gates[:, :H])
    f = jax.nn.sigmoid(gates[:, H:2 * H])
    g = jnp.tanh(gates[:, 2 * H:3 * H])
    o = jax.nn.sigmoid(gates[:, 3 * H:])
    c1 = f * c0 + i * g
    h1 = o * jnp.tanh(c1)
    logits = h1 @ params["w_fc_t"] + params["b_fc"]
    return logits, h1[None], c1[None]


if __name__ == "__main__":
    batch = 8
    hidden_size = 32
    output_size = 64
    num_layers = 1

    key = jax.random.PRNGKey(0)
    k_params, k_tok, k_h, k_c = jax.random.split(key, 4)

    params = init_params(k_params, hidden_size, output_size)

    x = jax.random.randint(k_tok, (batch,), 0, output_size, dtype=jnp.int32)
    hidden = jax.random.normal(k_h, (num_layers, batch, hidden_size), jnp.float32)
    cell = jax.random.normal(k_c, (num_layers, batch, hidden_size), jnp.float32)

    ref_logits, ref_h1, ref_c1 = reference_forward(x, hidden, cell, params)

    # ---- default path: bf16 W_fc stream (prep is done ONCE, reused per step) ----
    prepared_bf16 = prepare_params(params)                       # fc_dtype=bf16
    logits, h1, c1 = decoder_forward(x, hidden, cell, prepared_bf16)
    jax.block_until_ready((logits, h1, c1))

    assert logits.shape == (batch, output_size)
    assert h1.shape == (num_layers, batch, hidden_size)
    assert c1.shape == (num_layers, batch, hidden_size)
    # LSTM state is computed fully in f32 -> tight check.
    assert jnp.allclose(h1, ref_h1, atol=2e-5, rtol=2e-5)
    assert jnp.allclose(c1, ref_c1, atol=2e-5, rtol=2e-5)
    # Logits use bf16 weights (f32 accumulation) -> loosened tolerance.
    assert jnp.allclose(logits, ref_logits, atol=2e-2, rtol=2e-2)

    # ---- f32 path: exact-precision verification of the same kernels ----
    prepared_f32 = prepare_params(params, fc_dtype=jnp.float32)
    logits32, h1_32, c1_32 = decoder_forward(x, hidden, cell, prepared_f32)
    jax.block_until_ready((logits32, h1_32, c1_32))
    assert jnp.allclose(logits32, ref_logits, atol=2e-5, rtol=2e-5)
    assert jnp.allclose(h1_32, ref_h1, atol=2e-5, rtol=2e-5)
    assert jnp.allclose(c1_32, ref_c1, atol=2e-5, rtol=2e-5)

    print("KERNEL_OK")
</pallas_src>

<mosaic_0001>
module attributes {stable_mosaic.version = 11 : i64} {
  func.func @_lstm_step_kernel(%arg0: i32, %arg1: memref<8xi32, #tpu.memory_space<smem>>, %arg2: memref<64x128xf32, #tpu.memory_space<any>>, %arg3: memref<256x512xf32, #tpu.memory_space<any>>, %arg4: memref<8x128xf32, #tpu.memory_space<vmem>>, %arg5: memref<8x128xf32, #tpu.memory_space<vmem>>, %arg6: memref<1x512xf32, #tpu.memory_space<vmem>>, %arg7: memref<8x128xf32, #tpu.memory_space<vmem>>, %arg8: memref<8x128xf32, #tpu.memory_space<vmem>>, %arg9: memref<8x256xf32, #tpu.memory_space<vmem>>, %arg10: memref<256x512xf32, #tpu.memory_space<vmem>>, %arg11: memref<9x!tpu.dma_semaphore, #tpu.memory_space<semaphore_mem>>) attributes {dimension_semantics = [#tpu.dimension_semantics<arbitrary>], iteration_bounds = array<i64: 1>, scalar_prefetch = 1 : i64, scratch_operands = 3 : i64, tpu.core_type = #tpu.core_type<tc>, window_params = [{}, {}, {pipeline_mode = #tpu.pipeline_mode<synchronous>, transform_indices = @transform_2, window_bounds = array<i64: 8, 128>}, {pipeline_mode = #tpu.pipeline_mode<synchronous>, transform_indices = @transform_3, window_bounds = array<i64: 8, 128>}, {pipeline_mode = #tpu.pipeline_mode<synchronous>, transform_indices = @transform_4, window_bounds = array<i64: 1, 512>}, {pipeline_mode = #tpu.pipeline_mode<synchronous>, transform_indices = @transform_5, window_bounds = array<i64: 8, 128>}, {pipeline_mode = #tpu.pipeline_mode<synchronous>, transform_indices = @transform_6, window_bounds = array<i64: 8, 128>}]} {
    %c8_i32 = arith.constant 8 : i32
    %0 = tpu.memref_slice %arg11[%c8_i32] : memref<9x!tpu.dma_semaphore, #tpu.memory_space<semaphore_mem>> -> memref<1x!tpu.dma_semaphore, #tpu.memory_space<semaphore_mem>>
    %1 = tpu.memref_squeeze %0 : memref<1x!tpu.dma_semaphore, #tpu.memory_space<semaphore_mem>> -> memref<!tpu.dma_semaphore, #tpu.memory_space<semaphore_mem>>
    tpu.enqueue_dma source(%arg3 : memref<256x512xf32, #tpu.memory_space<any>>) target(%arg10 : memref<256x512xf32, #tpu.memory_space<vmem>>) target_semaphore(%1 : memref<!tpu.dma_semaphore, #tpu.memory_space<semaphore_mem>>)
    %c0 = arith.constant 0 : index
    %2 = memref.load %arg1[%c0] : memref<8xi32, #tpu.memory_space<smem>>
    %c0_i32 = arith.constant 0 : i32
    %c0_i32_0 = arith.constant 0 : i32
    %3 = tpu.memref_slice %arg2[%2, %c0_i32_0] : memref<64x128xf32, #tpu.memory_space<any>> -> memref<1x128xf32, #tpu.memory_space<any>>
    %c0_i32_1 = arith.constant 0 : i32
    %c0_i32_2 = arith.constant 0 : i32
    %4 = tpu.memref_slice %arg9[%c0_i32_1, %c0_i32_2] : memref<8x256xf32, #tpu.memory_space<vmem>> -> memref<1x128xf32, #tpu.memory_space<vmem>>
    %5 = tpu.memref_slice %arg11[%c0_i32] : memref<9x!tpu.dma_semaphore, #tpu.memory_space<semaphore_mem>> -> memref<1x!tpu.dma_semaphore, #tpu.memory_space<semaphore_mem>>
    %6 = tpu.memref_squeeze %5 : memref<1x!tpu.dma_semaphore, #tpu.memory_space<semaphore_mem>> -> memref<!tpu.dma_semaphore, #tpu.memory_space<semaphore_mem>>
    tpu.enqueue_dma source(%3 : memref<1x128xf32, #tpu.memory_space<any>>) target(%4 : memref<1x128xf32, #tpu.memory_space<vmem>>) target_semaphore(%6 : memref<!tpu.dma_semaphore, #tpu.memory_space<semaphore_mem>>)
    %c1 = arith.constant 1 : index
    %7 = memref.load %arg1[%c1] : memref<8xi32, #tpu.memory_space<smem>>
    %c1_i32 = arith.constant 1 : i32
    %c0_i32_3 = arith.constant 0 : i32
    %8 = tpu.memref_slice %arg2[%7, %c0_i32_3] : memref<64x128xf32, #tpu.memory_space<any>> -> memref<1x128xf32, #tpu.memory_space<any>>
    %c1_i32_4 = arith.constant 1 : i32
    %c0_i32_5 = arith.constant 0 : i32
    %9 = tpu.memref_slice %arg9[%c1_i32_4, %c0_i32_5] : memref<8x256xf32, #tpu.memory_space<vmem>> -> memref<1x128xf32, #tpu.memory_space<vmem>>
    %10 = tpu.memref_slice %arg11[%c1_i32] : memref<9x!tpu.dma_semaphore, #tpu.memory_space<semaphore_mem>> -> memref<1x!tpu.dma_semaphore, #tpu.memory_space<semaphore_mem>>
    %11 = tpu.memref_squeeze %10 : memref<1x!tpu.dma_semaphore, #tpu.memory_space<semaphore_mem>> -> memref<!tpu.dma_semaphore, #tpu.memory_space<semaphore_mem>>
    tpu.enqueue_dma source(%8 : memref<1x128xf32, #tpu.memory_space<any>>) target(%9 : memref<1x128xf32, #tpu.memory_space<vmem>>) target_semaphore(%11 : memref<!tpu.dma_semaphore, #tpu.memory_space<semaphore_mem>>)
    %c2 = arith.constant 2 : index
    %12 = memref.load %arg1[%c2] : memref<8xi32, #tpu.memory_space<smem>>
    %c2_i32 = arith.constant 2 : i32
    %c0_i32_6 = arith.constant 0 : i32
    %13 = tpu.memref_slice %arg2[%12, %c0_i32_6] : memref<64x128xf32, #tpu.memory_space<any>> -> memref<1x128xf32, #tpu.memory_space<any>>
    %c2_i32_7 = arith.constant 2 : i32
    %c0_i32_8 = arith.constant 0 : i32
    %14 = tpu.memref_slice %arg9[%c2_i32_7, %c0_i32_8] : memref<8x256xf32, #tpu.memory_space<vmem>> -> memref<1x128xf32, #tpu.memory_space<vmem>>
    %15 = tpu.memref_slice %arg11[%c2_i32] : memref<9x!tpu.dma_semaphore, #tpu.memory_space<semaphore_mem>> -> memref<1x!tpu.dma_semaphore, #tpu.memory_space<semaphore_mem>>
    %16 = tpu.memref_squeeze %15 : memref<1x!tpu.dma_semaphore, #tpu.memory_space<semaphore_mem>> -> memref<!tpu.dma_semaphore, #tpu.memory_space<semaphore_mem>>
    tpu.enqueue_dma source(%13 : memref<1x128xf32, #tpu.memory_space<any>>) target(%14 : memref<1x128xf32, #tpu.memory_space<vmem>>) target_semaphore(%16 : memref<!tpu.dma_semaphore, #tpu.memory_space<semaphore_mem>>)
    %c3 = arith.constant 3 : index
    %17 = memref.load %arg1[%c3] : memref<8xi32, #tpu.memory_space<smem>>
    %c3_i32 = arith.constant 3 : i32
    %c0_i32_9 = arith.constant 0 : i32
    %18 = tpu.memref_slice %arg2[%17, %c0_i32_9] : memref<64x128xf32, #tpu.memory_space<any>> -> memref<1x128xf32, #tpu.memory_space<any>>
    %c3_i32_10 = arith.constant 3 : i32
    %c0_i32_11 = arith.constant 0 : i32
    %19 = tpu.memref_slice %arg9[%c3_i32_10, %c0_i32_11] : memref<8x256xf32, #tpu.memory_space<vmem>> -> memref<1x128xf32, #tpu.memory_space<vmem>>
    %20 = tpu.memref_slice %arg11[%c3_i32] : memref<9x!tpu.dma_semaphore, #tpu.memory_space<semaphore_mem>> -> memref<1x!tpu.dma_semaphore, #tpu.memory_space<semaphore_mem>>
    %21 = tpu.memref_squeeze %20 : memref<1x!tpu.dma_semaphore, #tpu.memory_space<semaphore_mem>> -> memref<!tpu.dma_semaphore, #tpu.memory_space<semaphore_mem>>
    tpu.enqueue_dma source(%18 : memref<1x128xf32, #tpu.memory_space<any>>) target(%19 : memref<1x128xf32, #tpu.memory_space<vmem>>) target_semaphore(%21 : memref<!tpu.dma_semaphore, #tpu.memory_space<semaphore_mem>>)
    %c4 = arith.constant 4 : index
    %22 = memref.load %arg1[%c4] : memref<8xi32, #tpu.memory_space<smem>>
    %c4_i32 = arith.constant 4 : i32
    %c0_i32_12 = arith.constant 0 : i32
    %23 = tpu.memref_slice %arg2[%22, %c0_i32_12] : memref<64x128xf32, #tpu.memory_space<any>> -> memref<1x128xf32, #tpu.memory_space<any>>
    %c4_i32_13 = arith.constant 4 : i32
    %c0_i32_14 = arith.constant 0 : i32
    %24 = tpu.memref_slice %arg9[%c4_i32_13, %c0_i32_14] : memref<8x256xf32, #tpu.memory_space<vmem>> -> memref<1x128xf32, #tpu.memory_space<vmem>>
    %25 = tpu.memref_slice %arg11[%c4_i32] : memref<9x!tpu.dma_semaphore, #tpu.memory_space<semaphore_mem>> -> memref<1x!tpu.dma_semaphore, #tpu.memory_space<semaphore_mem>>
    %26 = tpu.memref_squeeze %25 : memref<1x!tpu.dma_semaphore, #tpu.memory_space<semaphore_mem>> -> memref<!tpu.dma_semaphore, #tpu.memory_space<semaphore_mem>>
    tpu.enqueue_dma source(%23 : memref<1x128xf32, #tpu.memory_space<any>>) target(%24 : memref<1x128xf32, #tpu.memory_space<vmem>>) target_semaphore(%26 : memref<!tpu.dma_semaphore, #tpu.memory_space<semaphore_mem>>)
    %c5 = arith.constant 5 : index
    %27 = memref.load %arg1[%c5] : memref<8xi32, #tpu.memory_space<smem>>
    %c5_i32 = arith.constant 5 : i32
    %c0_i32_15 = arith.constant 0 : i32
    %28 = tpu.memref_slice %arg2[%27, %c0_i32_15] : memref<64x128xf32, #tpu.memory_space<any>> -> memref<1x128xf32, #tpu.memory_space<any>>
    %c5_i32_16 = arith.constant 5 : i32
    %c0_i32_17 = arith.constant 0 : i32
    %29 = tpu.memref_slice %arg9[%c5_i32_16, %c0_i32_17] : memref<8x256xf32, #tpu.memory_space<vmem>> -> memref<1x128xf32, #tpu.memory_space<vmem>>
    %30 = tpu.memref_slice %arg11[%c5_i32] : memref<9x!tpu.dma_semaphore, #tpu.memory_space<semaphore_mem>> -> memref<1x!tpu.dma_semaphore, #tpu.memory_space<semaphore_mem>>
    %31 = tpu.memref_squeeze %30 : memref<1x!tpu.dma_semaphore, #tpu.memory_space<semaphore_mem>> -> memref<!tpu.dma_semaphore, #tpu.memory_space<semaphore_mem>>
    tpu.enqueue_dma source(%28 : memref<1x128xf32, #tpu.memory_space<any>>) target(%29 : memref<1x128xf32, #tpu.memory_space<vmem>>) target_semaphore(%31 : memref<!tpu.dma_semaphore, #tpu.memory_space<semaphore_mem>>)
    %c6 = arith.constant 6 : index
    %32 = memref.load %arg1[%c6] : memref<8xi32, #tpu.memory_space<smem>>
    %c6_i32 = arith.constant 6 : i32
    %c0_i32_18 = arith.constant 0 : i32
    %33 = tpu.memref_slice %arg2[%32, %c0_i32_18] : memref<64x128xf32, #tpu.memory_space<any>> -> memref<1x128xf32, #tpu.memory_space<any>>
    %c6_i32_19 = arith.constant 6 : i32
    %c0_i32_20 = arith.constant 0 : i32
    %34 = tpu.memref_slice %arg9[%c6_i32_19, %c0_i32_20] : memref<8x256xf32, #tpu.memory_space<vmem>> -> memref<1x128xf32, #tpu.memory_space<vmem>>
    %35 = tpu.memref_slice %arg11[%c6_i32] : memref<9x!tpu.dma_semaphore, #tpu.memory_space<semaphore_mem>> -> memref<1x!tpu.dma_semaphore, #tpu.memory_space<semaphore_mem>>
    %36 = tpu.memref_squeeze %35 : memref<1x!tpu.dma_semaphore, #tpu.memory_space<semaphore_mem>> -> memref<!tpu.dma_semaphore, #tpu.memory_space<semaphore_mem>>
    tpu.enqueue_dma source(%33 : memref<1x128xf32, #tpu.memory_space<any>>) target(%34 : memref<1x128xf32, #tpu.memory_space<vmem>>) target_semaphore(%36 : memref<!tpu.dma_semaphore, #tpu.memory_space<semaphore_mem>>)
    %c7 = arith.constant 7 : index
    %37 = memref.load %arg1[%c7] : memref<8xi32, #tpu.memory_space<smem>>
    %c7_i32 = arith.constant 7 : i32
    %c0_i32_21 = arith.constant 0 : i32
    %38 = tpu.memref_slice %arg2[%37, %c0_i32_21] : memref<64x128xf32, #tpu.memory_space<any>> -> memref<1x128xf32, #tpu.memory_space<any>>
    %c7_i32_22 = arith.constant 7 : i32
    %c0_i32_23 = arith.constant 0 : i32
    %39 = tpu.memref_slice %arg9[%c7_i32_22, %c0_i32_23] : memref<8x256xf32, #tpu.memory_space<vmem>> -> memref<1x128xf32, #tpu.memory_space<vmem>>
    %40 = tpu.memref_slice %arg11[%c7_i32] : memref<9x!tpu.dma_semaphore, #tpu.memory_space<semaphore_mem>> -> memref<1x!tpu.dma_semaphore, #tpu.memory_space<semaphore_mem>>
    %41 = tpu.memref_squeeze %40 : memref<1x!tpu.dma_semaphore, #tpu.memory_space<semaphore_mem>> -> memref<!tpu.dma_semaphore, #tpu.memory_space<semaphore_mem>>
    tpu.enqueue_dma source(%38 : memref<1x128xf32, #tpu.memory_space<any>>) target(%39 : memref<1x128xf32, #tpu.memory_space<vmem>>) target_semaphore(%41 : memref<!tpu.dma_semaphore, #tpu.memory_space<semaphore_mem>>)
    %c0_24 = arith.constant 0 : index
    %c0_25 = arith.constant 0 : index
    %42 = vector.load %arg4[%c0_24, %c0_25] : memref<8x128xf32, #tpu.memory_space<vmem>>, vector<8x128xf32>
    %c0_26 = arith.constant 0 : index
    %c128 = arith.constant 128 : index
    %43 = vector.load %arg9[%c0_26, %c128] : memref<8x256xf32, #tpu.memory_space<vmem>>, vector<8x128xf32>
    tpu.vector_store %arg9[%c0_26, %c128], %42 {strides = array<i32>} : memref<8x256xf32, #tpu.memory_space<vmem>>, vector<8x128xf32>,
    %c0_i32_27 = arith.constant 0 : i32
    %c0_i32_28 = arith.constant 0 : i32
    %44 = tpu.memref_slice %arg2[%2, %c0_i32_28] : memref<64x128xf32, #tpu.memory_space<any>> -> memref<1x128xf32, #tpu.memory_space<any>>
    %c0_i32_29 = arith.constant 0 : i32
    %c0_i32_30 = arith.constant 0 : i32
    %45 = tpu.memref_slice %arg9[%c0_i32_29, %c0_i32_30] : memref<8x256xf32, #tpu.memory_space<vmem>> -> memref<1x128xf32, #tpu.memory_space<vmem>>
    %46 = tpu.memref_slice %arg11[%c0_i32_27] : memref<9x!tpu.dma_semaphore, #tpu.memory_space<semaphore_mem>> -> memref<1x!tpu.dma_semaphore, #tpu.memory_space<semaphore_mem>>
    %47 = tpu.memref_squeeze %46 : memref<1x!tpu.dma_semaphore, #tpu.memory_space<semaphore_mem>> -> memref<!tpu.dma_semaphore, #tpu.memory_space<semaphore_mem>>
    tpu.wait_dma2 semaphore(%47 : memref<!tpu.dma_semaphore, #tpu.memory_space<semaphore_mem>>) src(%44 : memref<1x128xf32, #tpu.memory_space<any>>) dst(%45 : memref<1x128xf32, #tpu.memory_space<vmem>>)
    %c1_i32_31 = arith.constant 1 : i32
    %c0_i32_32 = arith.constant 0 : i32
    %48 = tpu.memref_slice %arg2[%7, %c0_i32_32] : memref<64x128xf32, #tpu.memory_space<any>> -> memref<1x128xf32, #tpu.memory_space<any>>
    %c1_i32_33 = arith.constant 1 : i32
    %c0_i32_34 = arith.constant 0 : i32
    %49 = tpu.memref_slice %arg9[%c1_i32_33, %c0_i32_34] : memref<8x256xf32, #tpu.memory_space<vmem>> -> memref<1x128xf32, #tpu.memory_space<vmem>>
    %50 = tpu.memref_slice %arg11[%c1_i32_31] : memref<9x!tpu.dma_semaphore, #tpu.memory_space<semaphore_mem>> -> memref<1x!tpu.dma_semaphore, #tpu.memory_space<semaphore_mem>>
    %51 = tpu.memref_squeeze %50 : memref<1x!tpu.dma_semaphore, #tpu.memory_space<semaphore_mem>> -> memref<!tpu.dma_semaphore, #tpu.memory_space<semaphore_mem>>
    tpu.wait_dma2 semaphore(%51 : memref<!tpu.dma_semaphore, #tpu.memory_space<semaphore_mem>>) src(%48 : memref<1x128xf32, #tpu.memory_space<any>>) dst(%49 : memref<1x128xf32, #tpu.memory_space<vmem>>)
    %c2_i32_35 = arith.constant 2 : i32
    %c0_i32_36 = arith.constant 0 : i32
    %52 = tpu.memref_slice %arg2[%12, %c0_i32_36] : memref<64x128xf32, #tpu.memory_space<any>> -> memref<1x128xf32, #tpu.memory_space<any>>
    %c2_i32_37 = arith.constant 2 : i32
    %c0_i32_38 = arith.constant 0 : i32
    %53 = tpu.memref_slice %arg9[%c2_i32_37, %c0_i32_38] : memref<8x256xf32, #tpu.memory_space<vmem>> -> memref<1x128xf32, #tpu.memory_space<vmem>>
    %54 = tpu.memref_slice %arg11[%c2_i32_35] : memref<9x!tpu.dma_semaphore, #tpu.memory_space<semaphore_mem>> -> memref<1x!tpu.dma_semaphore, #tpu.memory_space<semaphore_mem>>
    %55 = tpu.memref_squeeze %54 : memref<1x!tpu.dma_semaphore, #tpu.memory_space<semaphore_mem>> -> memref<!tpu.dma_semaphore, #tpu.memory_space<semaphore_mem>>
    tpu.wait_dma2 semaphore(%55 : memref<!tpu.dma_semaphore, #tpu.memory_space<semaphore_mem>>) src(%52 : memref<1x128xf32, #tpu.memory_space<any>>) dst(%53 : memref<1x128xf32, #tpu.memory_space<vmem>>)
    %c3_i32_39 = arith.constant 3 : i32
    %c0_i32_40 = arith.constant 0 : i32
    %56 = tpu.memref_slice %arg2[%17, %c0_i32_40] : memref<64x128xf32, #tpu.memory_space<any>> -> memref<1x128xf32, #tpu.memory_space<any>>
    %c3_i32_41 = arith.constant 3 : i32
    %c0_i32_42 = arith.constant 0 : i32
    %57 = tpu.memref_slice %arg9[%c3_i32_41, %c0_i32_42] : memref<8x256xf32, #tpu.memory_space<vmem>> -> memref<1x128xf32, #tpu.memory_space<vmem>>
    %58 = tpu.memref_slice %arg11[%c3_i32_39] : memref<9x!tpu.dma_semaphore, #tpu.memory_space<semaphore_mem>> -> memref<1x!tpu.dma_semaphore, #tpu.memory_space<semaphore_mem>>
    %59 = tpu.memref_squeeze %58 : memref<1x!tpu.dma_semaphore, #tpu.memory_space<semaphore_mem>> -> memref<!tpu.dma_semaphore, #tpu.memory_space<semaphore_mem>>
    tpu.wait_dma2 semaphore(%59 : memref<!tpu.dma_semaphore, #tpu.memory_space<semaphore_mem>>) src(%56 : memref<1x128xf32, #tpu.memory_space<any>>) dst(%57 : memref<1x128xf32, #tpu.memory_space<vmem>>)
    %c4_i32_43 = arith.constant 4 : i32
    %c0_i32_44 = arith.constant 0 : i32
    %60 = tpu.memref_slice %arg2[%22, %c0_i32_44] : memref<64x128xf32, #tpu.memory_space<any>> -> memref<1x128xf32, #tpu.memory_space<any>>
    %c4_i32_45 = arith.constant 4 : i32
    %c0_i32_46 = arith.constant 0 : i32
    %61 = tpu.memref_slice %arg9[%c4_i32_45, %c0_i32_46] : memref<8x256xf32, #tpu.memory_space<vmem>> -> memref<1x128xf32, #tpu.memory_space<vmem>>
    %62 = tpu.memref_slice %arg11[%c4_i32_43] : memref<9x!tpu.dma_semaphore, #tpu.memory_space<semaphore_mem>> -> memref<1x!tpu.dma_semaphore, #tpu.memory_space<semaphore_mem>>
    %63 = tpu.memref_squeeze %62 : memref<1x!tpu.dma_semaphore, #tpu.memory_space<semaphore_mem>> -> memref<!tpu.dma_semaphore, #tpu.memory_space<semaphore_mem>>
    tpu.wait_dma2 semaphore(%63 : memref<!tpu.dma_semaphore, #tpu.memory_space<semaphore_mem>>) src(%60 : memref<1x128xf32, #tpu.memory_space<any>>) dst(%61 : memref<1x128xf32, #tpu.memory_space<vmem>>)
    %c5_i32_47 = arith.constant 5 : i32
    %c0_i32_48 = arith.constant 0 : i32
    %64 = tpu.memref_slice %arg2[%27, %c0_i32_48] : memref<64x128xf32, #tpu.memory_space<any>> -> memref<1x128xf32, #tpu.memory_space<any>>
    %c5_i32_49 = arith.constant 5 : i32
    %c0_i32_50 = arith.constant 0 : i32
    %65 = tpu.memref_slice %arg9[%c5_i32_49, %c0_i32_50] : memref<8x256xf32, #tpu.memory_space<vmem>> -> memref<1x128xf32, #tpu.memory_space<vmem>>
    %66 = tpu.memref_slice %arg11[%c5_i32_47] : memref<9x!tpu.dma_semaphore, #tpu.memory_space<semaphore_mem>> -> memref<1x!tpu.dma_semaphore, #tpu.memory_space<semaphore_mem>>
    %67 = tpu.memref_squeeze %66 : memref<1x!tpu.dma_semaphore, #tpu.memory_space<semaphore_mem>> -> memref<!tpu.dma_semaphore, #tpu.memory_space<semaphore_mem>>
    tpu.wait_dma2 semaphore(%67 : memref<!tpu.dma_semaphore, #tpu.memory_space<semaphore_mem>>) src(%64 : memref<1x128xf32, #tpu.memory_space<any>>) dst(%65 : memref<1x128xf32, #tpu.memory_space<vmem>>)
    %c6_i32_51 = arith.constant 6 : i32
    %c0_i32_52 = arith.constant 0 : i32
    %68 = tpu.memref_slice %arg2[%32, %c0_i32_52] : memref<64x128xf32, #tpu.memory_space<any>> -> memref<1x128xf32, #tpu.memory_space<any>>
    %c6_i32_53 = arith.constant 6 : i32
    %c0_i32_54 = arith.constant 0 : i32
    %69 = tpu.memref_slice %arg9[%c6_i32_53, %c0_i32_54] : memref<8x256xf32, #tpu.memory_space<vmem>> -> memref<1x128xf32, #tpu.memory_space<vmem>>
    %70 = tpu.memref_slice %arg11[%c6_i32_51] : memref<9x!tpu.dma_semaphore, #tpu.memory_space<semaphore_mem>> -> memref<1x!tpu.dma_semaphore, #tpu.memory_space<semaphore_mem>>
    %71 = tpu.memref_squeeze %70 : memref<1x!tpu.dma_semaphore, #tpu.memory_space<semaphore_mem>> -> memref<!tpu.dma_semaphore, #tpu.memory_space<semaphore_mem>>
    tpu.wait_dma2 semaphore(%71 : memref<!tpu.dma_semaphore, #tpu.memory_space<semaphore_mem>>) src(%68 : memref<1x128xf32, #tpu.memory_space<any>>) dst(%69 : memref<1x128xf32, #tpu.memory_space<vmem>>)
    %c7_i32_55 = arith.constant 7 : i32
    %c0_i32_56 = arith.constant 0 : i32
    %72 = tpu.memref_slice %arg2[%37, %c0_i32_56] : memref<64x128xf32, #tpu.memory_space<any>> -> memref<1x128xf32, #tpu.memory_space<any>>
    %c7_i32_57 = arith.constant 7 : i32
    %c0_i32_58 = arith.constant 0 : i32
    %73 = tpu.memref_slice %arg9[%c7_i32_57, %c0_i32_58] : memref<8x256xf32, #tpu.memory_space<vmem>> -> memref<1x128xf32, #tpu.memory_space<vmem>>
    %74 = tpu.memref_slice %arg11[%c7_i32_55] : memref<9x!tpu.dma_semaphore, #tpu.memory_space<semaphore_mem>> -> memref<1x!tpu.dma_semaphore, #tpu.memory_space<semaphore_mem>>
    %75 = tpu.memref_squeeze %74 : memref<1x!tpu.dma_semaphore, #tpu.memory_space<semaphore_mem>> -> memref<!tpu.dma_semaphore, #tpu.memory_space<semaphore_mem>>
    tpu.wait_dma2 semaphore(%75 : memref<!tpu.dma_semaphore, #tpu.memory_space<semaphore_mem>>) src(%72 : memref<1x128xf32, #tpu.memory_space<any>>) dst(%73 : memref<1x128xf32, #tpu.memory_space<vmem>>)
    %c8_i32_59 = arith.constant 8 : i32
    %76 = tpu.memref_slice %arg11[%c8_i32_59] : memref<9x!tpu.dma_semaphore, #tpu.memory_space<semaphore_mem>> -> memref<1x!tpu.dma_semaphore, #tpu.memory_space<semaphore_mem>>
    %77 = tpu.memref_squeeze %76 : memref<1x!tpu.dma_semaphore, #tpu.memory_space<semaphore_mem>> -> memref<!tpu.dma_semaphore, #tpu.memory_space<semaphore_mem>>
    tpu.wait_dma2 semaphore(%77 : memref<!tpu.dma_semaphore, #tpu.memory_space<semaphore_mem>>) src(%arg3 : memref<256x512xf32, #tpu.memory_space<any>>) dst(%arg10 : memref<256x512xf32, #tpu.memory_space<vmem>>)
    %c0_60 = arith.constant 0 : index
    %c0_61 = arith.constant 0 : index
    %78 = vector.load %arg9[%c0_60, %c0_61] : memref<8x256xf32, #tpu.memory_space<vmem>>, vector<8x256xf32>
    %c0_62 = arith.constant 0 : index
    %c0_63 = arith.constant 0 : index
    %79 = vector.load %arg10[%c0_62, %c0_63] : memref<256x512xf32, #tpu.memory_space<vmem>>, vector<256x512xf32>
    %cst = arith.constant dense<0.000000e+00> : vector<8x512xf32>
    %80 = tpu.matmul %78, %79, %cst {dimension_numbers = #tpu.dot_dimension_numbers<[1], [0], [0], [1], [0, 0, 1, 1], [], []>} : vector<8x256xf32>, vector<256x512xf32>, vector<8x512xf32> -> vector<8x512xf32>
    %c0_64 = arith.constant 0 : index
    %c0_65 = arith.constant 0 : index
    %81 = vector.load %arg6[%c0_64, %c0_65] : memref<1x512xf32, #tpu.memory_space<vmem>>, vector<1x512xf32>
    %82 = vector.broadcast %81 : vector<1x512xf32> to vector<8x512xf32>
    %83 = arith.addf %80, %82 : vector<8x512xf32>
    %84 = vector.extract_strided_slice %83 {offsets = [0, 0], sizes = [8, 128], strides = [1, 1]} : vector<8x512xf32> to vector<8x128xf32>
    %85 = arith.negf %84 : vector<8x128xf32>
    %86 = math.exp %85 : vector<8x128xf32>
    %cst_66 = arith.constant 1.000000e+00 : f32
    %87 = vector.broadcast %cst_66 : f32 to vector<8x128xf32>
    %88 = arith.addf %87, %86 : vector<8x128xf32>
    %89 = arith.divf %87, %88 : vector<8x128xf32>
    %90 = vector.extract_strided_slice %83 {offsets = [0, 128], sizes = [8, 128], strides = [1, 1]} : vector<8x512xf32> to vector<8x128xf32>
    %91 = arith.negf %90 : vector<8x128xf32>
    %92 = math.exp %91 : vector<8x128xf32>
    %cst_67 = arith.constant 1.000000e+00 : f32
    %93 = vector.broadcast %cst_67 : f32 to vector<8x128xf32>
    %94 = arith.addf %93, %92 : vector<8x128xf32>
    %95 = arith.divf %93, %94 : vector<8x128xf32>
    %96 = vector.extract_strided_slice %83 {offsets = [0, 256], sizes = [8, 128], strides = [1, 1]} : vector<8x512xf32> to vector<8x128xf32>
    %97 = math.tanh %96 : vector<8x128xf32>
    %98 = vector.extract_strided_slice %83 {offsets = [0, 384], sizes = [8, 128], strides = [1, 1]} : vector<8x512xf32> to vector<8x128xf32>
    %99 = arith.negf %98 : vector<8x128xf32>
    %100 = math.exp %99 : vector<8x128xf32>
    %cst_68 = arith.constant 1.000000e+00 : f32
    %101 = vector.broadcast %cst_68 : f32 to vector<8x128xf32>
    %102 = arith.addf %101, %100 : vector<8x128xf32>
    %103 = arith.divf %101, %102 : vector<8x128xf32>
    %c0_69 = arith.constant 0 : index
    %c0_70 = arith.constant 0 : index
    %104 = vector.load %arg5[%c0_69, %c0_70] : memref<8x128xf32, #tpu.memory_space<vmem>>, vector<8x128xf32>
    %105 = arith.mulf %95, %104 : vector<8x128xf32>
    %106 = arith.mulf %89, %97 : vector<8x128xf32>
    %107 = arith.addf %105, %106 : vector<8x128xf32>
    %108 = math.tanh %107 : vector<8x128xf32>
    %109 = arith.mulf %103, %108 : vector<8x128xf32>
    %c0_71 = arith.constant 0 : index
    %c0_72 = arith.constant 0 : index
    %110 = vector.load %arg8[%c0_71, %c0_72] : memref<8x128xf32, #tpu.memory_space<vmem>>, vector<8x128xf32>
    tpu.vector_store %arg8[%c0_71, %c0_72], %107 {strides = array<i32>} : memref<8x128xf32, #tpu.memory_space<vmem>>, vector<8x128xf32>,
    %c0_73 = arith.constant 0 : index
    %c0_74 = arith.constant 0 : index
    %111 = vector.load %arg7[%c0_73, %c0_74] : memref<8x128xf32, #tpu.memory_space<vmem>>, vector<8x128xf32>
    tpu.vector_store %arg7[%c0_73, %c0_74], %109 {strides = array<i32>} : memref<8x128xf32, #tpu.memory_space<vmem>>, vector<8x128xf32>,
    return
  }
  func.func @transform_2(%arg0: i32, %arg1: memref<8xi32, #tpu.memory_space<smem>>) -> (i32, i32) {
    %c0_i32 = arith.constant 0 : i32
    %c0_i32_0 = arith.constant 0 : i32
    %c0_i32_1 = arith.constant 0 : i32
    return %c0_i32, %c0_i32_0 : i32, i32
  }
  func.func @transform_3(%arg0: i32, %arg1: memref<8xi32, #tpu.memory_space<smem>>) -> (i32, i32) {
    %c0_i32 = arith.constant 0 : i32
    %c0_i32_0 = arith.constant 0 : i32
    %c0_i32_1 = arith.constant 0 : i32
    return %c0_i32, %c0_i32_0 : i32, i32
  }
  func.func @transform_4(%arg0: i32, %arg1: memref<8xi32, #tpu.memory_space<smem>>) -> (i32, i32) {
    %c0_i32 = arith.constant 0 : i32
    %c0_i32_0 = arith.constant 0 : i32
    %c0_i32_1 = arith.constant 0 : i32
    return %c0_i32, %c0_i32_0 : i32, i32
  }
  func.func @transform_5(%arg0: i32, %arg1: memref<8xi32, #tpu.memory_space<smem>>) -> (i32, i32) {
    %c0_i32 = arith.constant 0 : i32
    %c0_i32_0 = arith.constant 0 : i32
    %c0_i32_1 = arith.constant 0 : i32
    return %c0_i32, %c0_i32_0 : i32, i32
  }
  func.func @transform_6(%arg0: i32, %arg1: memref<8xi32, #tpu.memory_space<smem>>) -> (i32, i32) {
    %c0_i32 = arith.constant 0 : i32
    %c0_i32_0 = arith.constant 0 : i32
    %c0_i32_1 = arith.constant 0 : i32
    return %c0_i32, %c0_i32_0 : i32, i32
  }
}

</mosaic_0001>

<bundles_post_ra>
// kernel: tpu_custom_call.1
= control target key start
LH: loop header
LB: loop body
LE: loop exit
PB: predicated region body
PF: predicated region fallthrough
CT: control target
= control target key end

     0   :  { %s1099_s27 = smov [#allocation6]   ;;  %s1276_s0 = inlined_call_operand.hbm [shape: s32[8], index: 0, kind: input, shape index: {}]   ;;  %s1277_s1 = inlined_call_operand.hbm [shape: f32[64,128], index: 1, kind: input, shape index: {}]   ;;  %s1278_s2 = inlined_call_operand.hbm [shape: f32[256,512], index: 2, kind: input, shape index: {}]   ;;  %s1279_s3 = inlined_call_operand.hbm [shape: f32[8,128], index: 3, kind: input, shape index: {}]   ;;  %s1280_s4 = inlined_call_operand.hbm [shape: f32[8,128], index: 4, kind: input, shape index: {}]   ;;  %s1281_s5 = inlined_call_operand.vmem [shape: f32[1,512], index: 5, kind: input, shape index: {}]   ;;  %s1282_s6 = inlined_call_operand.hbm [shape: f32[8,128], index: 6, kind: output, shape index: {0}]   ;;  %s1283_s7 = inlined_call_operand.hbm [shape: f32[8,128], index: 7, kind: output, shape index: {1}]  }
   0x1   :  { %s14_s26 = sshll.u32 %s1276_s0, 4  ;;  %s15_s26 = int_to_ptr.hbm [resolvable:$true] %s14_s26 }
   0x2   :  { %17 = dma.hbm_to_smem %s15_s26, 16, %s1099_s27, [#allocation5] }
   0x3   :  { %1071 = dma.done.wait [#allocation5], 16 }
   0x4   :  { %1072 = vsyncadd [#allocation5], 4294967280 }
   0x5   :  { %20 = sfence }
   0x6   :  { %21 = vsyncpa [#allocation8], 0 }
   0x7   :  { %22 = vsyncpa [#allocation11], 0 }
   0x8   :  { %23 = vsyncpa [#allocation9], 0 }
   0x9   :  { %24 = vsyncpa [#allocation14], 0  ;;  %s30_s30 = sshll.u32 %s1279_s3, 4  ;;  %s1100_s8 = smov [#allocation7]   ;;  %s31_s30 = int_to_ptr.hbm [resolvable:$true] %s30_s30 }
   0xa   :  { %s32_s9 = sshll.u32 %s1100_s8, 4  ;;  %s41_s11 = sshll.u32 %s1280_s4, 4  ;;  %s33_s9 = int_to_ptr.vmem [resolvable:$true] %s32_s9  ;;  %s42_s11 = int_to_ptr.hbm [resolvable:$true] %s41_s11 }
   0xb   :  { %35 = dma.hbm_to_vmem [thread:$0]  %s31_s30, 128, %s33_s9, [#allocation8]  }
   0xc   :  { %s1101_s12 = smov [#allocation10]  }
   0xd   :  { %s43_s13 = sshll.u32 %s1101_s12, 4  ;;  %s44_s13 = int_to_ptr.vmem [resolvable:$true] %s43_s13 }
   0xe   :  { %46 = dma.hbm_to_vmem [thread:$0]  %s42_s11, 128, %s44_s13, [#allocation11]  }
   0xf   :  { %1073 = dma.done.wait [#allocation8], 128  }
  0x10   :  { %1074 = vsyncadd [#allocation8], 4294967168 }
  0x11   :  { %1075 = dma.done.wait [#allocation11], 128  }
  0x12   :  { %1076 = vsyncadd [#allocation11], 4294967168  ;;  %s65_s15 = sshll.u32 %s1278_s2, 4  ;;  %s1102_s16 = smov [#allocation3]   ;;  %s66_s15 = int_to_ptr.hbm [resolvable:$true] %s65_s15 }
  0x13   :  { %s67_s17 = sshll.u32 %s1102_s16, 4  ;;  %s71_s18 = sld [smem:[#allocation6]]  ;;  %s68_s17 = int_to_ptr.vmem [resolvable:$true] %s67_s17 }
  0x14   :  { %70 = dma.hbm_to_vmem [thread:$0]  %s66_s15, 16384, %s68_s17, [#allocation4 + $0x8] }
  0x15   :  { %s698_s4 = sld [smem:[#allocation6 + $0x1]]  ;;  %s1103_s19 = smov [#allocation2]  }
  0x16   :  { %s82_s20 = sshll.u32 %s1103_s19, 4  ;;  %s1104_s21 = smov [#allocation2 + $0x1]   ;;  %s83_s20 = int_to_ptr.vmem [resolvable:$true] %s82_s20 }
  0x17   :  { %s1165_s22 = sshll.u32 %s1104_s21, 4  ;;  %s1168_s23 = sld [smem:[#allocation6 + $0x2]]  ;;  %s100_s22 = int_to_ptr.vmem [resolvable:$true] %s1165_s22 }
  0x18   :  { %s1105_s27 = smov [#allocation2 + $0x2]   ;;  %s1181_s12 = scalar_lea.hbm %s1277_s1, 64 }
  0x19   :  { %s72_s2 = scalar_lea.hbm %s1277_s1, %s71_s18  ;;  %s1173_s28 = sshll.u32 %s1105_s27, 4  ;;  %s117_s28 = int_to_ptr.vmem [resolvable:$true] %s1173_s28 }
  0x1a   :  { %s80_s26 = sshll.u32 %s72_s2, 4  ;;  %s81_s26 = int_to_ptr.hbm [resolvable:$true] %s80_s26 }
  0x1b   :  { %s87_s8 = scalar_lea.hbm %s1277_s1, %s698_s4  ;;  %s831_s9 = sshra.s32 %s81_s26, 4  ;;  %s832_s9 = int_to_ptr.hbm [resolvable:$true] %s831_s9 }
  0x1c   :  { %s833_s10 = scalar_lea.hbm %s832_s9, 1  ;;  %p836_p1 = scmp.lt.s32.totalorder %s832_s9, %s1277_s1 }
  0x1d   :  { %p834_p0 = scmp.ne.s32.totalorder %s832_s9, %s833_s10  ;;  %p837_p2 = scmp.lt.s32.totalorder %s1181_s12, %s833_s10 }
  0x1f   :  { %p838_p3 = por %p837_p2, %p836_p1 }
  0x21   :  { %p839_p4 = pnand %p838_p3, %p834_p0 }
  0x23   :  { %842 = shalt.err (!%p839_p4)  }
  0x24   :  { %85 = dma.hbm_to_vmem [thread:$0]  %s81_s26, 16, %s83_s20, [#allocation4] }
  0x25   :  { %s97_s3 = sshll.u32 %s87_s8, 4  ;;  %s104_s17 = scalar_lea.hbm %s1277_s1, %s1168_s23  ;;  %s98_s3 = int_to_ptr.hbm [resolvable:$true] %s97_s3 }
  0x26   :  { %s855_s18 = sshra.s32 %s98_s3, 4  ;;  %s856_s18 = int_to_ptr.hbm [resolvable:$true] %s855_s18 }
  0x27   :  { %s857_s4 = scalar_lea.hbm %s856_s18, 1  ;;  %p860_p6 = scmp.lt.s32.totalorder %s856_s18, %s1277_s1 }
  0x28   :  { %p858_p5 = scmp.ne.s32.totalorder %s856_s18, %s857_s4  ;;  %p861_p7 = scmp.lt.s32.totalorder %s1181_s12, %s857_s4 }
  0x2a   :  { %p862_p8 = por %p861_p7, %p860_p6 }
  0x2c   :  { %p863_p9 = pnand %p862_p8, %p858_p5 }
  0x2e   :  { %866 = shalt.err (!%p863_p9)  }
  0x2f   :  { %102 = dma.hbm_to_vmem [thread:$0]  %s98_s3, 16, %s100_s22, [#allocation4 + $0x1] }
  0x30   :  { %s114_s20 = sshll.u32 %s104_s17, 4  ;;  %s700_s24 = sld [smem:[#allocation6 + $0x3]]  ;;  %s115_s20 = int_to_ptr.hbm [resolvable:$true] %s114_s20 }
  0x31   :  { %s879_s23 = sshra.s32 %s115_s20, 4  ;;  %s880_s23 = int_to_ptr.hbm [resolvable:$true] %s879_s23 }
  0x32   :  { %s881_s25 = scalar_lea.hbm %s880_s23, 1  ;;  %p884_p11 = scmp.lt.s32.totalorder %s880_s23, %s1277_s1 }
  0x33   :  { %p882_p10 = scmp.ne.s32.totalorder %s880_s23, %s881_s25  ;;  %p885_p12 = scmp.lt.s32.totalorder %s1181_s12, %s881_s25 }
  0x35   :  { %p886_p13 = por %p885_p12, %p884_p11 }
  0x37   :  { %p887_p0 = pnand %p886_p13, %p882_p10 }
  0x39   :  { %890 = shalt.err (!%p887_p0)  }
  0x3a   :  { %119 = dma.hbm_to_vmem [thread:$0]  %s115_s20, 16, %s117_s28, [#allocation4 + $0x2] }
  0x3b   :  { %s1106_s27 = smov [#allocation2 + $0x3]   ;;  %s701_s30 = sld [smem:[#allocation6 + $0x4]] }
  0x3c   :  { %s133_s29 = sshll.u32 %s1106_s27, 4  ;;  %s1107_s22 = smov [#allocation2 + $0x4]   ;;  %s134_s29 = int_to_ptr.vmem [resolvable:$true] %s133_s29 }
  0x3d   :  { %s1202_s8 = sshll.u32 %s1107_s22, 4  ;;  %s702_s9 = sld [smem:[#allocation6 + $0x5]]  ;;  %s151_s8 = int_to_ptr.vmem [resolvable:$true] %s1202_s8 }
  0x3e   :  { %s121_s11 = scalar_lea.hbm %s1277_s1, %s700_s24  ;;  %s1108_s14 = smov [#allocation2 + $0x5]  }
  0x3f   :  { %s131_s13 = sshll.u32 %s121_s11, 4  ;;  %s1208_s3 = sshll.u32 %s1108_s14, 4  ;;  %s132_s13 = int_to_ptr.hbm [resolvable:$true] %s131_s13  ;;  %s168_s3 = int_to_ptr.vmem [resolvable:$true] %s1208_s3 }
  0x40   :  { %s903_s28 = sshra.s32 %s132_s13, 4  ;;  %s904_s28 = int_to_ptr.hbm [resolvable:$true] %s903_s28 }
  0x41   :  { %s905_s15 = scalar_lea.hbm %s904_s28, 1  ;;  %p908_p2 = scmp.lt.s32.totalorder %s904_s28, %s1277_s1 }
  0x42   :  { %p906_p1 = scmp.ne.s32.totalorder %s904_s28, %s905_s15  ;;  %p909_p3 = scmp.lt.s32.totalorder %s1181_s12, %s905_s15 }
  0x44   :  { %p910_p4 = por %p909_p3, %p908_p2 }
  0x46   :  { %p911_p5 = pnand %p910_p4, %p906_p1 }
  0x48   :  { %914 = shalt.err (!%p911_p5)  }
  0x49   :  { %136 = dma.hbm_to_vmem [thread:$0]  %s132_s13, 16, %s134_s29, [#allocation4 + $0x3] }
  0x4a   :  { %s138_s19 = scalar_lea.hbm %s1277_s1, %s701_s30  ;;  %s155_s23 = scalar_lea.hbm %s1277_s1, %s702_s9 }
  0x4b   :  { %s148_s21 = sshll.u32 %s138_s19, 4  ;;  %s165_s25 = sshll.u32 %s155_s23, 4  ;;  %s149_s21 = int_to_ptr.hbm [resolvable:$true] %s148_s21  ;;  %s166_s25 = int_to_ptr.hbm [resolvable:$true] %s165_s25 }
  0x4c   :  { %s927_s2 = sshra.s32 %s149_s21, 4  ;;  %s928_s2 = int_to_ptr.hbm [resolvable:$true] %s927_s2 }
  0x4d   :  { %s929_s26 = scalar_lea.hbm %s928_s2, 1  ;;  %p932_p7 = scmp.lt.s32.totalorder %s928_s2, %s1277_s1 }
  0x4e   :  { %p930_p6 = scmp.ne.s32.totalorder %s928_s2, %s929_s26  ;;  %p933_p8 = scmp.lt.s32.totalorder %s1181_s12, %s929_s26 }
  0x50   :  { %p934_p9 = por %p933_p8, %p932_p7 }
  0x52   :  { %p935_p10 = pnand %p934_p9, %p930_p6 }
  0x54   :  { %938 = shalt.err (!%p935_p10)  }
  0x55   :  { %153 = dma.hbm_to_vmem [thread:$0]  %s149_s21, 16, %s151_s8, [#allocation4 + $0x4] }
  0x56   :  { %s703_s30 = sld [smem:[#allocation6 + $0x6]]  ;;  %s951_s22 = sshra.s32 %s166_s25, 4  ;;  %s952_s22 = int_to_ptr.hbm [resolvable:$true] %s951_s22 }
  0x57   :  { %s953_s9 = scalar_lea.hbm %s952_s22, 1  ;;  %p956_p12 = scmp.lt.s32.totalorder %s952_s22, %s1277_s1 }
  0x58   :  { %p954_p11 = scmp.ne.s32.totalorder %s952_s22, %s953_s9  ;;  %p957_p13 = scmp.lt.s32.totalorder %s1181_s12, %s953_s9 }
  0x5a   :  { %p958_p0 = por %p957_p13, %p956_p12 }
  0x5c   :  { %p959_p1 = pnand %p958_p0, %p954_p11 }
  0x5e   :  { %962 = shalt.err (!%p959_p1)  }
  0x5f   :  { %170 = dma.hbm_to_vmem [thread:$0]  %s166_s25, 16, %s168_s3, [#allocation4 + $0x5] }
  0x60   :  { %s704_s11 = sld [smem:[#allocation6 + $0x7]]  ;;  %s1109_s13 = smov [#allocation2 + $0x6]  }
  0x61   :  { %s184_s14 = sshll.u32 %s1109_s13, 4  ;;  %s1110_s8 = smov [#allocation2 + $0x7]   ;;  %s185_s14 = int_to_ptr.vmem [resolvable:$true] %s184_s14 }
  0x62   :  { %s1231_s28 = sshll.u32 %s1110_s8, 4  ;;  %s172_s17 = scalar_lea.hbm %s1277_s1, %s703_s30  ;;  %s202_s28 = int_to_ptr.vmem [resolvable:$true] %s1231_s28 }
  0x63   :  { %s182_s18 = sshll.u32 %s172_s17, 4  ;;  %s183_s18 = int_to_ptr.hbm [resolvable:$true] %s182_s18 }
  0x64   :  { %s975_s21 = sshra.s32 %s183_s18, 4  ;;  %s976_s21 = int_to_ptr.hbm [resolvable:$true] %s975_s21 }
  0x65   :  { %s977_s20 = scalar_lea.hbm %s976_s21, 1  ;;  %p980_p3 = scmp.lt.s32.totalorder %s976_s21, %s1277_s1 }
  0x66   :  { %s189_s3 = scalar_lea.hbm %s1277_s1, %s704_s11  ;;  %p978_p2 = scmp.ne.s32.totalorder %s976_s21, %s977_s20 }
  0x67   :  { %p981_p4 = scmp.lt.s32.totalorder %s1181_s12, %s977_s20 }
  0x69   :  { %p982_p5 = por %p981_p4, %p980_p3 }
  0x6b   :  { %p983_p6 = pnand %p982_p5, %p978_p2 }
  0x6d   :  { %986 = shalt.err (!%p983_p6)  }
  0x6e   :  { %187 = dma.hbm_to_vmem [thread:$0]  %s183_s18, 16, %s185_s14, [#allocation4 + $0x6]  ;;  %v205_v0 = vld [vmem:[#allocation7] sm:$0xff] }
  0x6f   :  { %s199_s25 = sshll.u32 %s189_s3, 4  ;;  %s200_s25 = int_to_ptr.hbm [resolvable:$true] %s199_s25 }
  0x70   :  { %s999_s2 = sshra.s32 %s200_s25, 4  ;;  %s1000_s2 = int_to_ptr.hbm [resolvable:$true] %s999_s2 }
  0x71   :  { %s1001_s26 = scalar_lea.hbm %s1000_s2, 1  ;;  %p1004_p8 = scmp.lt.s32.totalorder %s1000_s2, %s1277_s1 }
  0x72   :  { %p1002_p7 = scmp.ne.s32.totalorder %s1000_s2, %s1001_s26  ;;  %p1005_p9 = scmp.lt.s32.totalorder %s1181_s12, %s1001_s26 }
  0x74   :  { %p1006_p10 = por %p1005_p9, %p1004_p8 }
  0x76   :  { %p1007_p11 = pnand %p1006_p10, %p1002_p7 }
  0x78   :  { %1010 = shalt.err (!%p1007_p11)  }
  0x79   :  { %204 = dma.hbm_to_vmem [thread:$0]  %s200_s25, 16, %s202_s28, [#allocation4 + $0x7] }
  0x7a   :  { %206 = vst [vmem:[#allocation2 + $0x8] sm:$0xff] %v205_v0 }
  0x7b   :  { %1077 = dma.done.wait [#allocation4], 16 }
  0x7c   :  { %1078 = vsyncadd [#allocation4], 4294967280 }
  0x7d   :  { %1079 = dma.done.wait [#allocation4 + $0x1], 16 }
  0x7e   :  { %1080 = vsyncadd [#allocation4 + $0x1], 4294967280 }
  0x7f   :  { %1081 = dma.done.wait [#allocation4 + $0x2], 16 }
  0x80   :  { %1082 = vsyncadd [#allocation4 + $0x2], 4294967280 }
  0x81   :  { %1083 = dma.done.wait [#allocation4 + $0x3], 16 }
  0x82   :  { %1084 = vsyncadd [#allocation4 + $0x3], 4294967280 }
  0x83   :  { %1085 = dma.done.wait [#allocation4 + $0x4], 16 }
  0x84   :  { %1086 = vsyncadd [#allocation4 + $0x4], 4294967280 }
  0x85   :  { %1087 = dma.done.wait [#allocation4 + $0x5], 16 }
  0x86   :  { %1088 = vsyncadd [#allocation4 + $0x5], 4294967280 }
  0x87   :  { %1089 = dma.done.wait [#allocation4 + $0x6], 16 }
  0x88   :  { %1090 = vsyncadd [#allocation4 + $0x6], 4294967280 }
  0x89   :  { %1091 = dma.done.wait [#allocation4 + $0x7], 16 }
  0x8a   :  { %1092 = vsyncadd [#allocation4 + $0x7], 4294967280 }
  0x8b   :  { %1093 = dma.done.wait [#allocation4 + $0x8], 16384 }
  0x8c   :  { %1094 = vsyncadd [#allocation4 + $0x8], 4294950912  ;;  %v291_v1 = vld [vmem:[#allocation3 + $0x1e8] sm:$0xff]  ;;  %v290_v4 = vld [vmem:[#allocation3 + $0x1e0] sm:$0xff]  ;;  %s612_s10 = sshll.u32 %s1283_s7, 4  ;;  %s1112_s7 = smov [#allocation12]   ;;  %s613_s10 = int_to_ptr.hbm [resolvable:$true] %s612_s10 }
  0x8d   :  { %v287_v2 = vld [vmem:[#allocation3 + $0x1c8] sm:$0xff]  ;;  %408 = vmatpush.msra.mxu2 %v291_v1  ;;  %368 = vmatpush.msra.mxu0 %v290_v4  ;;  %v286_v7 = vld [vmem:[#allocation3 + $0x1c0] sm:$0xff]  ;;  %v293_v62 = vld [vmem:[#allocation3 + $0x1f8] sm:$0xff]  ;;  %s599_s0 = sshll.u32 %s1112_s7, 4  ;;  %s601_s14 = sshll.u32 %s1282_s6, 4  ;;  %s600_s0 = int_to_ptr.vmem [resolvable:$true] %s599_s0  ;;  %s602_s14 = int_to_ptr.hbm [resolvable:$true] %s601_s14 }
  0x8e   :  { %v355_v3 = vld [vmem:[#allocation3 + $0x3e8] sm:$0xff]  ;;  %v354_v8 = vld [vmem:[#allocation3 + $0x3e0] sm:$0xff]  ;;  %v357_v1 = vld [vmem:[#allocation3 + $0x3f8] sm:$0xff] }
  0x8f   :  { %428 = vmatpush.msra.mxu3 %v355_v3  ;;  %v351_v5 = vld [vmem:[#allocation3 + $0x3c8] sm:$0xff]  ;;  %409 = vmatpush.msra.mxu2 %v287_v2  ;;  %v282_v10 = vld [vmem:[#allocation3 + $0x1a0] sm:$0xff]  ;;  %v289_v2 = vld [vmem:[#allocation3 + $0x1d8] sm:$0xff] }
  0x90   :  { %v283_v6 = vld [vmem:[#allocation3 + $0x1a8] sm:$0xff]  ;;  %v350_v11 = vld [vmem:[#allocation3 + $0x3c0] sm:$0xff]  ;;  %369 = vmatpush.msra.mxu0 %v286_v7  ;;  %388 = vmatpush.msra.mxu1 %v354_v8  ;;  %v292_v3 = vld [vmem:[#allocation3 + $0x1f0] sm:$0xff] }
  0x91   :  { %429 = vmatpush.msra.mxu3 %v351_v5  ;;  %v347_v9 = vld [vmem:[#allocation3 + $0x3a8] sm:$0xff]  ;;  %410 = vmatpush.msra.mxu2 %v283_v6  ;;  %v278_v14 = vld [vmem:[#allocation3 + $0x180] sm:$0xff]  ;;  %v353_v5 = vld [vmem:[#allocation3 + $0x3d8] sm:$0xff] }
  0x92   :  { %v279_v12 = vld [vmem:[#allocation3 + $0x188] sm:$0xff]  ;;  %v346_v15 = vld [vmem:[#allocation3 + $0x3a0] sm:$0xff]  ;;  %370 = vmatpush.msra.mxu0 %v282_v10  ;;  %389 = vmatpush.msra.mxu1 %v350_v11  ;;  %v285_v6 = vld [vmem:[#allocation3 + $0x1b8] sm:$0xff] }
  0x93   :  { %v343_v13 = vld [vmem:[#allocation3 + $0x388] sm:$0xff]  ;;  %430 = vmatpush.msra.mxu3 %v347_v9  ;;  %411 = vmatpush.msra.mxu2 %v279_v12  ;;  %v274_v18 = vld [vmem:[#allocation3 + $0x160] sm:$0xff]  ;;  %v288_v7 = vld [vmem:[#allocation3 + $0x1d0] sm:$0xff] }
  0x94   :  { %v275_v16 = vld [vmem:[#allocation3 + $0x168] sm:$0xff]  ;;  %v342_v19 = vld [vmem:[#allocation3 + $0x380] sm:$0xff]  ;;  %371 = vmatpush.msra.mxu0 %v278_v14  ;;  %390 = vmatpush.msra.mxu1 %v346_v15  ;;  %v356_v8 = vld [vmem:[#allocation3 + $0x3f0] sm:$0xff] }
  0x95   :  { %v339_v17 = vld [vmem:[#allocation3 + $0x368] sm:$0xff]  ;;  %431 = vmatpush.msra.mxu3 %v343_v13  ;;  %412 = vmatpush.msra.mxu2 %v275_v16  ;;  %v270_v22 = vld [vmem:[#allocation3 + $0x140] sm:$0xff]  ;;  %v349_v9 = vld [vmem:[#allocation3 + $0x3b8] sm:$0xff] }
  0x96   :  { %v271_v20 = vld [vmem:[#allocation3 + $0x148] sm:$0xff]  ;;  %v338_v23 = vld [vmem:[#allocation3 + $0x360] sm:$0xff]  ;;  %372 = vmatpush.msra.mxu0 %v274_v18  ;;  %391 = vmatpush.msra.mxu1 %v342_v19  ;;  %v281_v10 = vld [vmem:[#allocation3 + $0x198] sm:$0xff] }
  0x97   :  { %v335_v21 = vld [vmem:[#allocation3 + $0x348] sm:$0xff]  ;;  %432 = vmatpush.msra.mxu3 %v339_v17  ;;  %413 = vmatpush.msra.mxu2 %v271_v20  ;;  %v266_v26 = vld [vmem:[#allocation3 + $0x120] sm:$0xff]  ;;  %v284_v11 = vld [vmem:[#allocation3 + $0x1b0] sm:$0xff] }
  0x98   :  { %v267_v24 = vld [vmem:[#allocation3 + $0x128] sm:$0xff]  ;;  %v334_v27 = vld [vmem:[#allocation3 + $0x340] sm:$0xff]  ;;  %373 = vmatpush.msra.mxu0 %v270_v22  ;;  %392 = vmatpush.msra.mxu1 %v338_v23  ;;  %v1248_v12 = vld [vmem:[#allocation2] sm:$0xff] }
  0x99   :  { %v331_v25 = vld [vmem:[#allocation3 + $0x328] sm:$0xff]  ;;  %433 = vmatpush.msra.mxu3 %v335_v21  ;;  %414 = vmatpush.msra.mxu2 %v267_v24  ;;  %v262_v30 = vld [vmem:[#allocation3 + $0x100] sm:$0xff]  ;;  %v352_v13 = vld [vmem:[#allocation3 + $0x3d0] sm:$0xff] }
  0x9a   :  { %v263_v28 = vld [vmem:[#allocation3 + $0x108] sm:$0xff]  ;;  %v330_v31 = vld [vmem:[#allocation3 + $0x320] sm:$0xff]  ;;  %374 = vmatpush.msra.mxu0 %v266_v26  ;;  %393 = vmatpush.msra.mxu1 %v334_v27  ;;  %v277_v14 = vld [vmem:[#allocation3 + $0x178] sm:$0xff] }
  0x9b   :  { %v327_v29 = vld [vmem:[#allocation3 + $0x308] sm:$0xff]  ;;  %434 = vmatpush.msra.mxu3 %v331_v25  ;;  %415 = vmatpush.msra.mxu2 %v263_v28  ;;  %v258_v34 = vld [vmem:[#allocation3 + $0xe0] sm:$0xff]  ;;  %v345_v15 = vld [vmem:[#allocation3 + $0x398] sm:$0xff] }
  0x9c   :  { %v259_v32 = vld [vmem:[#allocation3 + $0xe8] sm:$0xff]  ;;  %v326_v35 = vld [vmem:[#allocation3 + $0x300] sm:$0xff]  ;;  %375 = vmatpush.msra.mxu0 %v262_v30  ;;  %394 = vmatpush.msra.mxu1 %v330_v31  ;;  %v1250_v16 = vld [vmem:[#allocation2 + $0x8] sm:$0xff] }
  0x9d   :  { %v323_v33 = vld [vmem:[#allocation3 + $0x2e8] sm:$0xff]  ;;  %435 = vmatpush.msra.mxu3 %v327_v29  ;;  %416 = vmatpush.msra.mxu2 %v259_v32  ;;  %v254_v38 = vld [vmem:[#allocation3 + $0xc0] sm:$0xff]  ;;  %v280_v17 = vld [vmem:[#allocation3 + $0x190] sm:$0xff] }
  0x9e   :  { %v255_v36 = vld [vmem:[#allocation3 + $0xc8] sm:$0xff]  ;;  %v322_v39 = vld [vmem:[#allocation3 + $0x2e0] sm:$0xff]  ;;  %376 = vmatpush.msra.mxu0 %v258_v34  ;;  %395 = vmatpush.msra.mxu1 %v326_v35  ;;  %v348_v18 = vld [vmem:[#allocation3 + $0x3b0] sm:$0xff] }
  0x9f   :  { %v319_v37 = vld [vmem:[#allocation3 + $0x2c8] sm:$0xff]  ;;  %436 = vmatpush.msra.mxu3 %v323_v33  ;;  %417 = vmatpush.msra.mxu2 %v255_v36  ;;  %v250_v42 = vld [vmem:[#allocation3 + $0xa0] sm:$0xff]  ;;  %v273_v19 = vld [vmem:[#allocation3 + $0x158] sm:$0xff] }
  0xa0   :  { %v251_v40 = vld [vmem:[#allocation3 + $0xa8] sm:$0xff]  ;;  %v318_v43 = vld [vmem:[#allocation3 + $0x2c0] sm:$0xff]  ;;  %377 = vmatpush.msra.mxu0 %v254_v38  ;;  %396 = vmatpush.msra.mxu1 %v322_v39  ;;  %v341_v20 = vld [vmem:[#allocation3 + $0x378] sm:$0xff] }
  0xa1   :  { %v315_v41 = vld [vmem:[#allocation3 + $0x2a8] sm:$0xff]  ;;  %437 = vmatpush.msra.mxu3 %v319_v37  ;;  %418 = vmatpush.msra.mxu2 %v251_v40  ;;  %v246_v46 = vld [vmem:[#allocation3 + $0x80] sm:$0xff]  ;;  %v276_v21 = vld [vmem:[#allocation3 + $0x170] sm:$0xff] }
  0xa2   :  { %v247_v44 = vld [vmem:[#allocation3 + $0x88] sm:$0xff]  ;;  %v314_v47 = vld [vmem:[#allocation3 + $0x2a0] sm:$0xff]  ;;  %378 = vmatpush.msra.mxu0 %v250_v42  ;;  %397 = vmatpush.msra.mxu1 %v318_v43  ;;  %v344_v22 = vld [vmem:[#allocation3 + $0x390] sm:$0xff] }
  0xa3   :  { %v311_v45 = vld [vmem:[#allocation3 + $0x288] sm:$0xff]  ;;  %438 = vmatpush.msra.mxu3 %v315_v41  ;;  %419 = vmatpush.msra.mxu2 %v247_v44  ;;  %v242_v50 = vld [vmem:[#allocation3 + $0x60] sm:$0xff]  ;;  %v269_v23 = vld [vmem:[#allocation3 + $0x138] sm:$0xff] }
  0xa4   :  { %v243_v48 = vld [vmem:[#allocation3 + $0x68] sm:$0xff]  ;;  %v310_v51 = vld [vmem:[#allocation3 + $0x280] sm:$0xff]  ;;  %379 = vmatpush.msra.mxu0 %v246_v46  ;;  %398 = vmatpush.msra.mxu1 %v314_v47  ;;  %v337_v24 = vld [vmem:[#allocation3 + $0x358] sm:$0xff] }
  0xa5   :  { %v307_v49 = vld [vmem:[#allocation3 + $0x268] sm:$0xff]  ;;  %439 = vmatpush.msra.mxu3 %v311_v45  ;;  %420 = vmatpush.msra.mxu2 %v243_v48  ;;  %v238_v54 = vld [vmem:[#allocation3 + $0x40] sm:$0xff]  ;;  %v272_v25 = vld [vmem:[#allocation3 + $0x150] sm:$0xff] }
  0xa6   :  { %v239_v52 = vld [vmem:[#allocation3 + $0x48] sm:$0xff]  ;;  %v306_v55 = vld [vmem:[#allocation3 + $0x260] sm:$0xff]  ;;  %380 = vmatpush.msra.mxu0 %v242_v50  ;;  %399 = vmatpush.msra.mxu1 %v310_v51  ;;  %v340_v26 = vld [vmem:[#allocation3 + $0x370] sm:$0xff] }
  0xa7   :  { %v303_v53 = vld [vmem:[#allocation3 + $0x248] sm:$0xff]  ;;  %440 = vmatpush.msra.mxu3 %v307_v49  ;;  %421 = vmatpush.msra.mxu2 %v239_v52  ;;  %v234_v58 = vld [vmem:[#allocation3 + $0x20] sm:$0xff]  ;;  %v265_v27 = vld [vmem:[#allocation3 + $0x118] sm:$0xff] }
  0xa8   :  { %v235_v56 = vld [vmem:[#allocation3 + $0x28] sm:$0xff]  ;;  %v302_v59 = vld [vmem:[#allocation3 + $0x240] sm:$0xff]  ;;  %381 = vmatpush.msra.mxu0 %v238_v54  ;;  %400 = vmatpush.msra.mxu1 %v306_v55  ;;  %v333_v28 = vld [vmem:[#allocation3 + $0x338] sm:$0xff] }
  0xa9   :  { %v299_v57 = vld [vmem:[#allocation3 + $0x228] sm:$0xff]  ;;  %441 = vmatpush.msra.mxu3 %v303_v53  ;;  %422 = vmatpush.msra.mxu2 %v235_v56  ;;  %v230_v63 = vld [vmem:[#allocation3] sm:$0xff]  ;;  %v268_v29 = vld [vmem:[#allocation3 + $0x130] sm:$0xff] }
  0xaa   :  { %v231_v60 = vld [vmem:[#allocation3 + $0x8] sm:$0xff]  ;;  %382 = vmatpush.msra.mxu0 %v234_v58  ;;  %401 = vmatpush.msra.mxu1 %v302_v59  ;;  %v298_v0 = vld [vmem:[#allocation3 + $0x220] sm:$0xff]  ;;  %v336_v30 = vld [vmem:[#allocation3 + $0x350] sm:$0xff] }
  0xab   :  { %v295_v61 = vld [vmem:[#allocation3 + $0x208] sm:$0xff]  ;;  %442 = vmatpush.msra.mxu3 %v299_v57  ;;  %423 = vmatpush.msra.mxu2 %v231_v60  ;;  %v294_v4 = vld [vmem:[#allocation3 + $0x200] sm:$0xff]  ;;  %v261_v31 = vld [vmem:[#allocation3 + $0xf8] sm:$0xff] }
  0xac   :  { %383 = vmatpush.msra.mxu0 %v230_v63  ;;  %402 = vmatpush.msra.mxu1 %v298_v0  ;;  %v329_v32 = vld [vmem:[#allocation3 + $0x318] sm:$0xff]  ;;  %v264_v33 = vld [vmem:[#allocation3 + $0x110] sm:$0xff] }
  0xad   :  { %443 = vmatpush.msra.mxu3 %v295_v61  ;;  %488 = vmatpush.msrb.mxu2 %v293_v62  ;;  %v332_v34 = vld [vmem:[#allocation3 + $0x330] sm:$0xff]  ;;  %v257_v35 = vld [vmem:[#allocation3 + $0xd8] sm:$0xff] }
  0xae   :  { %448 = vmatpush.msrb.mxu0 %v292_v3  ;;  %403 = vmatpush.msra.mxu1 %v294_v4  ;;  %v325_v36 = vld [vmem:[#allocation3 + $0x2f8] sm:$0xff]  ;;  %v260_v37 = vld [vmem:[#allocation3 + $0xf0] sm:$0xff]  ;;  %v358_v3 = vld [vmem:[%s1281_s5] sm:$0xf]  ;;  %s1111_s5 = smov [#allocation13]  }
  0xaf   :  { %508 = vmatpush.msrb.mxu3 %v357_v1  ;;  %489 = vmatpush.msrb.mxu2 %v289_v2  ;;  %v328_v38 = vld [vmem:[#allocation3 + $0x310] sm:$0xff]  ;;  %v253_v39 = vld [vmem:[#allocation3 + $0xb8] sm:$0xff]  ;;  %v360_v4 = vperm.slane %v358_v3, 0  ;;  %s610_s30 = sshll.u32 %s1111_s5, 4  ;;  %s611_s30 = int_to_ptr.vmem [resolvable:$true] %s610_s30 }
  0xb0   :  { %449 = vmatpush.msrb.mxu0 %v288_v7  ;;  %468 = vmatpush.msrb.mxu1 %v356_v8  ;;  %v321_v40 = vld [vmem:[#allocation3 + $0x2d8] sm:$0xff]  ;;  %v256_v41 = vld [vmem:[#allocation3 + $0xd0] sm:$0xff] }
  0xb1   :  { %509 = vmatpush.msrb.mxu3 %v353_v5  ;;  %490 = vmatpush.msrb.mxu2 %v285_v6  ;;  %v324_v42 = vld [vmem:[#allocation3 + $0x2f0] sm:$0xff]  ;;  %v249_v43 = vld [vmem:[#allocation3 + $0x98] sm:$0xff]  ;;  %v361_v5 = vperm.slane %v358_v3, 1 }
  0xb2   :  { %450 = vmatpush.msrb.mxu0 %v284_v11  ;;  %424 = vmatmul.f32.vlgmr.msra.gmra.mxu2 %v1248_v12  ;;  %v317_v44 = vld [vmem:[#allocation3 + $0x2b8] sm:$0xff]  ;;  %v252_v45 = vld [vmem:[#allocation3 + $0xb0] sm:$0xff] }
  0xb3   :  { %510 = vmatpush.msrb.mxu3 %v349_v9  ;;  %491 = vmatpush.msrb.mxu2 %v281_v10  ;;  %v320_v46 = vld [vmem:[#allocation3 + $0x2d0] sm:$0xff]  ;;  %v245_v47 = vld [vmem:[#allocation3 + $0x78] sm:$0xff] }
  0xb4   :  { %469 = vmatpush.msrb.mxu1 %v352_v13  ;;  %444 = vmatmul.f32.vlgmr.msra.gmra.mxu3 %v1250_v16  ;;  %v313_v48 = vld [vmem:[#allocation3 + $0x298] sm:$0xff]  ;;  %v248_v49 = vld [vmem:[#allocation3 + $0x90] sm:$0xff] }
  0xb5   :  { %492 = vmatpush.msrb.mxu2 %v277_v14  ;;  %511 = vmatpush.msrb.mxu3 %v345_v15  ;;  %v316_v50 = vld [vmem:[#allocation3 + $0x2b0] sm:$0xff]  ;;  %v241_v51 = vld [vmem:[#allocation3 + $0x58] sm:$0xff] }
  0xb6   :  { %451 = vmatpush.msrb.mxu0 %v280_v17  ;;  %470 = vmatpush.msrb.mxu1 %v348_v18  ;;  %v309_v52 = vld [vmem:[#allocation3 + $0x278] sm:$0xff]  ;;  %v244_v53 = vld [vmem:[#allocation3 + $0x70] sm:$0xff] }
  0xb7   :  { %493 = vmatpush.msrb.mxu2 %v273_v19  ;;  %512 = vmatpush.msrb.mxu3 %v341_v20  ;;  %v312_v54 = vld [vmem:[#allocation3 + $0x290] sm:$0xff]  ;;  %v237_v55 = vld [vmem:[#allocation3 + $0x38] sm:$0xff]  ;;  %v362_v20 = vperm.slane %v358_v3, 2 }
  0xb8   :  { %452 = vmatpush.msrb.mxu0 %v276_v21  ;;  %471 = vmatpush.msrb.mxu1 %v344_v22  ;;  %v305_v56 = vld [vmem:[#allocation3 + $0x258] sm:$0xff]  ;;  %v240_v57 = vld [vmem:[#allocation3 + $0x50] sm:$0xff] }
  0xb9   :  { %494 = vmatpush.msrb.mxu2 %v269_v23  ;;  %513 = vmatpush.msrb.mxu3 %v337_v24  ;;  %v308_v58 = vld [vmem:[#allocation3 + $0x270] sm:$0xff]  ;;  %v233_v59 = vld [vmem:[#allocation3 + $0x18] sm:$0xff] }
  0xba   :  { %384 = vmatmul.f32.vlgmr.msra.gmra.mxu0 %v1248_v12  ;;  %472 = vmatpush.msrb.mxu1 %v340_v26  ;;  %v301_v60 = vld [vmem:[#allocation3 + $0x238] sm:$0xff]  ;;  %v236_v61 = vld [vmem:[#allocation3 + $0x30] sm:$0xff] }
  0xbb   :  { %453 = vmatpush.msrb.mxu0 %v272_v25  ;;  %495 = vmatpush.msrb.mxu2 %v265_v27  ;;  %v304_v62 = vld [vmem:[#allocation3 + $0x250] sm:$0xff]  ;;  %v297_v63 = vld [vmem:[#allocation3 + $0x218] sm:$0xff]  ;;  %v363_v25 = vperm.slane %v358_v3, 3 }
  0xbc   :  { %514 = vmatpush.msrb.mxu3 %v333_v28  ;;  %404 = vmatmul.f32.vlgmr.msra.gmra.mxu1 %v1250_v16  ;;  %v232_v0 = vld [vmem:[#allocation3 + $0x10] sm:$0xff] }
  0xbd   :  { %454 = vmatpush.msrb.mxu0 %v268_v29  ;;  %473 = vmatpush.msrb.mxu1 %v336_v30  ;;  %v300_v1 = vld [vmem:[#allocation3 + $0x230] sm:$0xff] }
  0xbe   :  { %496 = vmatpush.msrb.mxu2 %v261_v31  ;;  %515 = vmatpush.msrb.mxu3 %v329_v32  ;;  %v296_v2 = vld [vmem:[#allocation3 + $0x210] sm:$0xff] }
  0xbf   :  { %455 = vmatpush.msrb.mxu0 %v264_v33  ;;  %474 = vmatpush.msrb.mxu1 %v332_v34 }
  0xc0   :  { %497 = vmatpush.msrb.mxu2 %v257_v35  ;;  %516 = vmatpush.msrb.mxu3 %v325_v36 }
  0xc1   :  { %456 = vmatpush.msrb.mxu0 %v260_v37  ;;  %475 = vmatpush.msrb.mxu1 %v328_v38 }
  0xc2   :  { %498 = vmatpush.msrb.mxu2 %v253_v39  ;;  %517 = vmatpush.msrb.mxu3 %v321_v40 }
  0xc3   :  { %457 = vmatpush.msrb.mxu0 %v256_v41  ;;  %476 = vmatpush.msrb.mxu1 %v324_v42 }
  0xc4   :  { %499 = vmatpush.msrb.mxu2 %v249_v43  ;;  %518 = vmatpush.msrb.mxu3 %v317_v44 }
  0xc5   :  { %458 = vmatpush.msrb.mxu0 %v252_v45  ;;  %477 = vmatpush.msrb.mxu1 %v320_v46 }
  0xc6   :  { %500 = vmatpush.msrb.mxu2 %v245_v47  ;;  %519 = vmatpush.msrb.mxu3 %v313_v48  ;;  %v586_v47 = vld [vmem:[#allocation10] sm:$0xff] }
  0xc7   :  { %459 = vmatpush.msrb.mxu0 %v248_v49  ;;  %478 = vmatpush.msrb.mxu1 %v316_v50 }
  0xc8   :  { %501 = vmatpush.msrb.mxu2 %v241_v51  ;;  %520 = vmatpush.msrb.mxu3 %v309_v52 }
  0xc9   :  { %460 = vmatpush.msrb.mxu0 %v244_v53  ;;  %479 = vmatpush.msrb.mxu1 %v312_v54 }
  0xca   :  { %502 = vmatpush.msrb.mxu2 %v237_v55  ;;  %521 = vmatpush.msrb.mxu3 %v305_v56 }
  0xcb   :  { %461 = vmatpush.msrb.mxu0 %v240_v57  ;;  %480 = vmatpush.msrb.mxu1 %v308_v58 }
  0xcc   :  { %503 = vmatpush.msrb.mxu2 %v233_v59  ;;  %522 = vmatpush.msrb.mxu3 %v301_v60 }
  0xcd   :  { %462 = vmatpush.msrb.mxu0 %v236_v61  ;;  %481 = vmatpush.msrb.mxu1 %v304_v62 }
  0xce   :  { %504 = vmatmul.f32.vlgmr.msrb.gmra.mxu2 %v1248_v12  ;;  %523 = vmatpush.msrb.mxu3 %v297_v63 }
  0xcf   :  { %463 = vmatpush.msrb.mxu0 %v232_v0  ;;  %482 = vmatpush.msrb.mxu1 %v300_v1 }
  0xd0   :  { %524 = vmatmul.f32.vlgmr.msrb.gmra.mxu3 %v1250_v16  ;;  %464 = vmatmul.f32.vlgmr.msrb.gmra.mxu0 %v1248_v12 }
  0xd1   :  { %483 = vmatpush.msrb.mxu1 %v296_v2 }
  0xd2   :  { %484 = vmatmul.f32.vlgmr.msrb.gmra.mxu1 %v1250_v16 }
 0x135   :  { %v425_v7 = vpop.f32.mrf.mxu2 }
 0x136   :  { %v426_v9 = vadd.f32 %v425_v7, %v361_v5 }
 0x137   :  { %v385_v6 = vpop.f32.mrf.mxu0  ;;  %v445_v10 = vpop.f32.mrf.mxu3 }
 0x138   :  { %v386_v8 = vadd.f32 %v385_v6, %v360_v4  ;;  %v446_v13 = vadd.f32 %v445_v10, %v426_v9 }
 0x139   :  { %v405_v11 = vpop.f32.mrf.mxu1 }
 0x13a   :  { %v406_v14 = vadd.f32 %v405_v11, %v386_v8  ;;  %v706_v15 = vmul.f32 -1.442695, %v446_v13 }
 0x13c   :  { %v705_v17 = vmul.f32 -1.442695, %v406_v14  ;;  %731 = vpow2.f32 %v706_v15 }
 0x13e   :  { %733 = vpow2.f32 %v705_v17 }
 0x142   :  { %v732_v12 = vpop.eup %731 }
 0x143   :  { %v550_v18 = vadd.f32 1.0, %v732_v12 }
 0x144   :  { %v734_v16 = vpop.eup %733 }
 0x145   :  { %v531_v19 = vadd.f32 1.0, %v734_v16  ;;  %735 = vrcp.f32 %v550_v18  ;;  %vm556_vm0 = vweird.f32 %v550_v18  ;;  %v562_v27 = vand.u32 2147483648, %v550_v18 }
 0x146   :  { %v560_v29 = vand.u32 2147483647, %v550_v18 }
 0x147   :  { %737 = vrcp.f32 %v531_v19  ;;  %vm537_vm2 = vweird.f32 %v531_v19  ;;  %v543_v32 = vand.u32 2147483648, %v531_v19  ;;  %v541_v35 = vand.u32 2147483647, %v531_v19 }
 0x148   :  { %v563_v40 = vor.u32 1.1754944e-38, %v562_v27  ;;  %vm561_vm6 = vcmp.eq.f32.partialorder %v560_v29, 8.507059e+37 }
 0x149   :  { %v544_v43 = vor.u32 1.1754944e-38, %v543_v32  ;;  %vm542_vm7 = vcmp.eq.f32.partialorder %v541_v35, 8.507059e+37 }
 0x14b   :  { %v736_v21 = vpop.eup %735 }
 0x14c   :  { %v552_v23 = vmul.f32 %v736_v21, %v550_v18  ;;  %vm557_vm1 = vweird.f32 %v736_v21 }
 0x14d   :  { %v738_v22 = vpop.eup %737  ;;  %v465_v24 = vpop.f32.mrf.mxu0  ;;  %vm1264_vm4 = vmor %vm556_vm0, %vm557_vm1 }
 0x14e   :  { %v533_v26 = vmul.f32 %v738_v22, %v531_v19  ;;  %v466_v28 = vadd.f32 %v465_v24, %v362_v20  ;;  %v553_v30 = vsub.f32 1.0, %v552_v23  ;;  %vm538_vm3 = vweird.f32 %v738_v22 }
 0x14f   :  { %v485_v31 = vpop.f32.mrf.mxu1  ;;  %vm539_vm5 = vmor %vm537_vm2, %vm538_vm3 }
 0x150   :  { %v534_v33 = vsub.f32 1.0, %v533_v26  ;;  %v486_v34 = vadd.f32 %v485_v31, %v466_v28  ;;  %v554_v37 = vmul.f32 %v736_v21, %v553_v30 }
 0x151   :  { %v505_v36 = vpop.f32.mrf.mxu2 }
 0x152   :  { %v506_v38 = vadd.f32 %v505_v36, %v363_v25  ;;  %v535_v41 = vmul.f32 %v738_v22, %v534_v33  ;;  %739 = vtanh.f32 %v486_v34  ;;  %v555_v44 = vadd.f32 %v736_v21, %v554_v37 }
 0x153   :  { %v525_v42 = vpop.f32.mrf.mxu3 }
 0x154   :  { %v526_v45 = vadd.f32 %v525_v42, %v506_v38  ;;  %v536_v46 = vadd.f32 %v738_v22, %v535_v41  ;;  %v559_v48 = vsel %vm1264_vm4, %v736_v21, %v555_v44 }
 0x155   :  { %v564_v51 = vsel %vm561_vm6, %v563_v40, %v559_v48 }
 0x156   :  { %v707_v49 = vmul.f32 -1.442695, %v526_v45  ;;  %v540_v50 = vsel %vm539_vm5, %v738_v22, %v536_v46  ;;  %v587_v53 = vmul.f32 %v586_v47, %v564_v51 }
 0x157   :  { %v545_v52 = vsel %vm542_vm7, %v544_v43, %v540_v50 }
 0x158   :  { %741 = vpow2.f32 %v707_v49  ;;  %v740_v54 = vpop.eup %739 }
 0x159   :  { %v588_v55 = vmul.f32 %v740_v54, %v545_v52 }
 0x15b   :  { %v589_v56 = vadd.f32 %v588_v55, %v587_v53 }
 0x15d   :  { %592 = vst [vmem:[#allocation13] sm:$0xff] %v589_v56 }
 0x15e   :  { %v742_v57 = vpop.eup %741  ;;  %615 = dma.vmem_to_hbm [thread:$0]  %s611_s30, 128, %s613_s10, [#allocation14]  }
 0x15f   :  { %v570_v58 = vadd.f32 1.0, %v742_v57 }
 0x161   :  { %743 = vrcp.f32 %v570_v58  ;;  %v582_v62 = vand.u32 2147483648, %v570_v58  ;;  %v580_v0 = vand.u32 2147483647, %v570_v58  ;;  %vm576_vm9 = vweird.f32 %v570_v58 }
 0x162   :  { %745 = vtanh.f32 %v589_v56 }
 0x163   :  { %v583_v2 = vor.u32 1.1754944e-38, %v582_v62  ;;  %vm581_vm11 = vcmp.eq.f32.partialorder %v580_v0, 8.507059e+37 }
 0x167   :  { %v744_v59 = vpop.eup %743 }
 0x168   :  { %v572_v60 = vmul.f32 %v744_v59, %v570_v58  ;;  %vm577_vm8 = vweird.f32 %v744_v59  ;;  %v746_v4 = vpop.eup %745 }
 0x169   :  { %vm578_vm10 = vmor %vm576_vm9, %vm577_vm8 }
 0x16a   :  { %v573_v61 = vsub.f32 1.0, %v572_v60 }
 0x16c   :  { %v574_v63 = vmul.f32 %v744_v59, %v573_v61 }
 0x16e   :  { %v575_v1 = vadd.f32 %v744_v59, %v574_v63 }
 0x170   :  { %v579_v3 = vsel %vm578_vm10, %v744_v59, %v575_v1 }
 0x171   :  { %v584_v5 = vsel %vm581_vm11, %v583_v2, %v579_v3 }
 0x172   :  { %v591_v6 = vmul.f32 %v746_v4, %v584_v5 }
 0x174   :  { %593 = vst [vmem:[#allocation12] sm:$0xff] %v591_v6 }
 0x175   :  { %604 = dma.vmem_to_hbm [thread:$0]  %s600_s0, 128, %s602_s14, [#allocation9]  }
 0x176   :  { %1095 = dma.done.wait [#allocation9], 128  }
 0x177   :  { %1096 = vsyncadd [#allocation9], 4294967168 }
 0x178   :  { %1097 = dma.done.wait [#allocation14], 128  }
 0x179   :  { %1098 = vsyncadd [#allocation14], 4294967168 }
 0x17a   :  { %624 = vsyncpa [#allocation8], 1 }
 0x17b   :  { %625 = vsyncpa [#allocation11], 1 }
 0x17c   :  { %626 = vsyncpa [#allocation9], 1 }
 0x17d   :  { %627 = vsyncpa [#allocation14], 1 }
 0x17e   :  { %628 = vsyncmov [#allocation4] }
 0x181   :  { %s629_s8 = vpop.sfrf %628 }
 0x182   :  { %p708_p12 = scmp.ne.s32.totalorder %s629_s8, 0 }
 0x184   :  { %633 = shalt.err (%p708_p12)  }
 0x185   :  { %635 = vsyncmov [#allocation4 + $0x1] }
 0x188   :  { %s636_s6 = vpop.sfrf %635 }
 0x189   :  { %p709_p13 = scmp.ne.s32.totalorder %s636_s6, 0 }
 0x18b   :  { %640 = shalt.err (%p709_p13)  }
 0x18c   :  { %642 = vsyncmov [#allocation4 + $0x2] }
 0x18f   :  { %s643_s28 = vpop.sfrf %642 }
 0x190   :  { %p710_p0 = scmp.ne.s32.totalorder %s643_s28, 0 }
 0x192   :  { %647 = shalt.err (%p710_p0)  }
 0x193   :  { %649 = vsyncmov [#allocation4 + $0x3] }
 0x196   :  { %s650_s15 = vpop.sfrf %649 }
 0x197   :  { %p711_p1 = scmp.ne.s32.totalorder %s650_s15, 0 }
 0x199   :  { %654 = shalt.err (%p711_p1)  }
 0x19a   :  { %656 = vsyncmov [#allocation4 + $0x4] }
 0x19d   :  { %s657_s16 = vpop.sfrf %656 }
 0x19e   :  { %p712_p2 = scmp.ne.s32.totalorder %s657_s16, 0 }
 0x1a0   :  { %661 = shalt.err (%p712_p2)  }
 0x1a1   :  { %663 = vsyncmov [#allocation4 + $0x5] }
 0x1a4   :  { %s664_s17 = vpop.sfrf %663 }
 0x1a5   :  { %p713_p3 = scmp.ne.s32.totalorder %s664_s17, 0 }
 0x1a7   :  { %668 = shalt.err (%p713_p3)  }
 0x1a8   :  { %670 = vsyncmov [#allocation4 + $0x6] }
 0x1ab   :  { %s671_s18 = vpop.sfrf %670 }
 0x1ac   :  { %p714_p4 = scmp.ne.s32.totalorder %s671_s18, 0 }
 0x1ae   :  { %675 = shalt.err (%p714_p4)  }
 0x1af   :  { %677 = vsyncmov [#allocation4 + $0x7] }
 0x1b2   :  { %s678_s4 = vpop.sfrf %677 }
 0x1b3   :  { %p715_p5 = scmp.ne.s32.totalorder %s678_s4, 0 }
 0x1b5   :  { %682 = shalt.err (%p715_p5)  }
 0x1b6   :  { %684 = vsyncmov [#allocation4 + $0x8] }
 0x1b9   :  { %s685_s19 = vpop.sfrf %684 }
 0x1ba   :  { %p716_p6 = scmp.ne.s32.totalorder %s685_s19, 0 }
 0x1bc   :  { %689 = shalt.err (%p716_p6)  }

</bundles_post_ra>
